<compile_context>
chip_gen: v5e
topology: v5e:2x2
jax: 0.10.0
libtpu: 0.0.40
codegen_flags: <defaults>
</compile_context>

<pallas_src>
import math
import numpy as np
import jax
import jax.numpy as jnp
from jax import lax
from jax.experimental import pallas as pl
from jax.experimental.pallas import tpu as pltpu

GROUP = 8  # stride of the Chebyshev recurrence == one f32 sublane tile


def netgcn_fused_kernel(x_ref, xmask_ref, g0t_ref, g1t_ref, m8t_ref,
                        wc_ref, bc_ref, wa_ref, mn_ref, sel_ref, rfold_ref,
                        bf_ref, o_ref):
    """Fused NetGCNBasic forward.

    x_ref:     (1, BN)       input signal, batch flattened onto lanes (BN = B*N)
    xmask_ref: (8, 8*BN)     block-diagonal placement mask for x
    g0t_ref:   (8*BN, BN)    stacked [T_0^T; ...; T_7^T]  (block-diag over batch)
    g1t_ref:   (8*BN, BN)    stacked [T_8^T; ...; T_15^T] (block-diag over batch)
    m8t_ref:   (BN, BN)      block-diag (2*T_8(L~))^T     (stride-8 recurrence op)
    wc_ref:    (32, G)       Chebyshev theta, zero-padded past row K-1
    bc_ref:    (1, G)        ChebConv bias
    wa_ref:    (G, N*D)      fc1 weight permuted: wa[g, n*D+d] = W[d, n*G+g]
    mn_ref:    (BN, N*D)     node-diagonal mask: 1 where (lane // D) == (row % N)
    sel_ref:   (B, BN)       batch-sum selector: 1 where (col // N) == row
    rfold_ref: (N*D, D)      lane fold: 1 where (row % D) == col
    bf_ref:    (1, D)        fc1 bias
    o_ref:     (B, D)        log-softmax output
    """
    f32 = jnp.float32

    # ---- block-diag-replicated x: x_big[j, j*BN + bn] = x[bn], else 0 ----
    x = x_ref[...]                                                    # (1, BN)
    xw = jnp.concatenate([x] * GROUP, axis=1)                         # (1, 8*BN)
    x_big = xmask_ref[...] * xw                                       # (8, 8*BN)

    # ---- Chebyshev basis: k on sublanes, batch*node on lanes ----
    # First two groups straight from stacked operators (two INDEPENDENT matmuls).
    s0 = jnp.dot(x_big, g0t_ref[...], preferred_element_type=f32)     # T_0 .. T_7  x
    s1 = jnp.dot(x_big, g1t_ref[...], preferred_element_type=f32)     # T_8 .. T_15 x
    # Remaining groups via the stride-8 recurrence: T_{k+8} = M8 T_k - T_{k-8}.
    m8t = m8t_ref[...]
    s2 = jnp.dot(s1, m8t, preferred_element_type=f32) - s0            # T_16 .. T_23 x
    s3 = jnp.dot(s2, m8t, preferred_element_type=f32) - s1            # T_24 .. T_31 x
    cheb = jnp.concatenate([s0, s1, s2, s3], axis=0)                  # (32, BN)

    # ---- ChebConv epilogue: conv[bn, g] = sum_k T_k[bn] * theta[k, g]; +bias, ReLU
    conv = lax.dot_general(cheb, wc_ref[...],
                           dimension_numbers=(((0,), (0,)), ((), ())),
                           preferred_element_type=f32)                # (BN, G)
    r = jnp.maximum(conv + bc_ref[...], 0.0)

    # ---- Linear(N*G -> D) as lane-dense MXU matmuls (no in-kernel flatten) ----
    # z[b,d] = sum_{n,g} r[b*N+n, g] * W[d, n*G+g] + bf[d]
    y = jnp.dot(r, wa_ref[...], preferred_element_type=f32)           # (BN, N*D)
    zw = jnp.dot(sel_ref[...], y * mn_ref[...],
                 preferred_element_type=f32)                          # (B, N*D)
    z = jnp.dot(zw, rfold_ref[...], preferred_element_type=f32) + bf_ref[...]  # (B, D)

    # ---- log_softmax, D on lanes ----
    m = jnp.max(z, axis=1, keepdims=True)
    lse = jnp.log(jnp.sum(jnp.exp(z - m), axis=1, keepdims=True)) + m
    o_ref[...] = z - lse


@jax.jit
def net_gcn_basic_forward(x, xmask, g0t, g1t, m8t, wc_pad, bc_row,
                          wa, mn, sel, rfold, bf_row):
    B, N = x.shape
    BN = B * N
    KP, G = wc_pad.shape
    ND, D = rfold.shape
    x_flat = x.reshape(1, BN)          # contiguous flatten, metadata-only, outside kernel
    return pl.pallas_call(
        netgcn_fused_kernel,
        out_shape=jax.ShapeDtypeStruct((B, D), jnp.float32),
        grid=(1,),
        in_specs=[
            pl.BlockSpec((1, BN), lambda i: (0, 0)),
            pl.BlockSpec((GROUP, GROUP * BN), lambda i: (0, 0)),
            pl.BlockSpec((GROUP * BN, BN), lambda i: (0, 0)),
            pl.BlockSpec((GROUP * BN, BN), lambda i: (0, 0)),
            pl.BlockSpec((BN, BN), lambda i: (0, 0)),
            pl.BlockSpec((KP, G), lambda i: (0, 0)),
            pl.BlockSpec((1, G), lambda i: (0, 0)),
            pl.BlockSpec((G, ND), lambda i: (0, 0)),
            pl.BlockSpec((BN, ND), lambda i: (0, 0)),
            pl.BlockSpec((B, BN), lambda i: (0, 0)),
            pl.BlockSpec((ND, D), lambda i: (0, 0)),
            pl.BlockSpec((1, D), lambda i: (0, 0)),
        ],
        out_specs=pl.BlockSpec((B, D), lambda i: (0, 0)),
        compiler_params=pltpu.CompilerParams(dimension_semantics=("arbitrary",)),
    )(x_flat, xmask, g0t, g1t, m8t, wc_pad, bc_row, wa, mn, sel, rfold, bf_row)


def build_cheb_operands(L, B, group=GROUP):
    """Host-precomputed Chebyshev operators (float64 -> float32).

    Returns (xmask, g0t, g1t, m8t):
      xmask (8, 8*BN), g0t/g1t (8*BN, BN) stacked [T_j^T] block-diag over batch,
      m8t (BN, BN) = block-diag (2*T_8)^T.
    """
    N = L.shape[0]
    BN = B * N
    T = [np.eye(N, dtype=np.float64), np.array(L, dtype=np.float64)]
    for _ in range(2, 2 * group):
        T.append(2.0 * L @ T[-1] - T[-2])           # T_2 .. T_15

    def bdiag(m):
        out = np.zeros((BN, BN), np.float64)
        for b in range(B):
            out[b * N:(b + 1) * N, b * N:(b + 1) * N] = m
        return out

    g0t = np.concatenate([bdiag(T[j].T) for j in range(group)], axis=0)
    g1t = np.concatenate([bdiag(T[group + j].T) for j in range(group)], axis=0)
    m8t = bdiag((2.0 * T[group]).T)
    xmask = (np.arange(group * BN)[None, :] // BN
             == np.arange(group)[:, None]).astype(np.float64)

    f32 = lambda a: jnp.asarray(np.asarray(a, np.float64).astype(np.float32))
    return f32(xmask), f32(g0t), f32(g1t), f32(m8t)


def build_fc_operands(wf, bf, B, N, G, D):
    """FC weight permutation + selector/mask/fold constants (host-side, f32)."""
    BN = B * N
    wa = np.transpose(np.asarray(wf, np.float64).reshape(D, N, G), (2, 1, 0)).reshape(G, N * D)
    mn = (np.arange(N * D)[None, :] // D == (np.arange(BN) % N)[:, None])
    sel = (np.arange(BN)[None, :] // N == np.arange(B)[:, None])
    rfold = (np.arange(N * D)[:, None] % D == np.arange(D)[None, :])
    f32 = lambda a: jnp.asarray(np.asarray(a, np.float64).astype(np.float32))
    bf_row = jnp.asarray(np.asarray(bf, np.float32).reshape(1, D))
    return f32(wa), f32(mn), f32(sel), f32(rfold), bf_row


def reference_forward(x, l_dense, wc, bc_row, wf, bf_row):
    """Pure-JAX reference mirroring the PyTorch module (dense laplacian)."""
    hi = lax.Precision.HIGHEST
    K = wc.shape[0]
    t = [x, jnp.matmul(x, l_dense.T, precision=hi)]
    for _ in range(2, K):
        t.append(2.0 * jnp.matmul(t[-1], l_dense.T, precision=hi) - t[-2])
    cheb = jnp.stack(t, axis=0)                                        # (K, B, N)
    conv = jnp.einsum("kbn,kg->bng", cheb, wc, precision=hi) + bc_row  # (B, N, G)
    h = jax.nn.relu(conv).reshape(x.shape[0], -1)                      # torch view(B, -1)
    z = jnp.matmul(h, wf.T, precision=hi) + bf_row
    return jax.nn.log_softmax(z, axis=1)


if __name__ == "__main__":
    B, N, G, K, D, IN_CH = 2, 64, 32, 25, 10, 1

    # Synthetic graph: bidirectional ring on N nodes, no self-loops
    # (remove_self_loops is then a no-op), unit edge weights.
    row = np.concatenate([np.arange(N), (np.arange(N) + 1) % N]).astype(np.int64)
    col = np.concatenate([(np.arange(N) + 1) % N, np.arange(N)]).astype(np.int64)
    ew = np.ones(row.shape[0], np.float64)

    deg = np.zeros(N, np.float64)
    np.add.at(deg, row, 1.0)                      # degree(row, N)
    dinv = deg ** -0.5
    dinv[np.isinf(dinv)] = 0.0
    lap = -dinv[row] * ew * dinv[col]             # ChebConv's lap values
    L = np.zeros((N, N), np.float64)
    np.add.at(L, (row, col), lap)                 # dense equivalent of spmm_batch scatter_add

    # Order-25 recurrence is only f32-stable if spectral radius <= 1 (kept per review).
    assert np.max(np.abs(np.linalg.eigvalsh(L))) <= 1.0 + 1e-6

    l_dense = jnp.asarray(L.astype(np.float32))
    xmask, g0t, g1t, m8t = build_cheb_operands(L, B)

    # Deterministic parameters (ChebConv.reset_parameters + nn.Linear-style uniform init)
    key = jax.random.PRNGKey(0)
    k1, k2, k3, k4, k5 = jax.random.split(key, 5)
    stdv = 1.0 / math.sqrt(IN_CH * K)
    wc_full = jax.random.uniform(k1, (K, IN_CH, G), jnp.float32, -stdv, stdv)  # (K, 1, 32)
    bc = jax.random.uniform(k2, (G,), jnp.float32, -stdv, stdv)
    bound = 1.0 / math.sqrt(N * G)
    wf = jax.random.uniform(k3, (D, N * G), jnp.float32, -bound, bound)        # torch Linear.weight
    bf = jax.random.uniform(k4, (D,), jnp.float32, -bound, bound)
    x = jax.random.normal(k5, (B, N), jnp.float32)

    wc = wc_full[:, 0, :]                                 # (K, G), in_channels=1 squeezed
    KP = 4 * GROUP                                        # pad K=25 -> 32 theta rows
    wc_pad = jnp.concatenate([wc, jnp.zeros((KP - K, G), jnp.float32)], axis=0)
    bc_row = bc.reshape(1, G)
    wa, mn, sel, rfold, bf_row = build_fc_operands(wf, bf, B, N, G, D)

    out = net_gcn_basic_forward(x, xmask, g0t, g1t, m8t, wc_pad, bc_row,
                                wa, mn, sel, rfold, bf_row)
    out = jax.block_until_ready(out)

    ref = reference_forward(x, l_dense, wc, bc_row, wf, bf.reshape(1, D))
    np.testing.assert_allclose(np.asarray(out), np.asarray(ref), rtol=2e-2, atol=2e-2)
    assert out.shape == (B, D) and bool(jnp.all(jnp.isfinite(out)))
    print("KERNEL_OK")
</pallas_src>

<mosaic_0001>
module attributes {stable_mosaic.version = 11 : i64} {
  func.func @netgcn_fused_kernel(%arg0: i32, %arg1: memref<1x128xf32, #tpu.memory_space<vmem>>, %arg2: memref<8x1024xf32, #tpu.memory_space<vmem>>, %arg3: memref<1024x128xf32, #tpu.memory_space<vmem>>, %arg4: memref<1024x128xf32, #tpu.memory_space<vmem>>, %arg5: memref<128x128xf32, #tpu.memory_space<vmem>>, %arg6: memref<32x32xf32, #tpu.memory_space<vmem>>, %arg7: memref<1x32xf32, #tpu.memory_space<vmem>>, %arg8: memref<32x640xf32, #tpu.memory_space<vmem>>, %arg9: memref<128x640xf32, #tpu.memory_space<vmem>>, %arg10: memref<2x128xf32, #tpu.memory_space<vmem>>, %arg11: memref<640x10xf32, #tpu.memory_space<vmem>>, %arg12: memref<1x10xf32, #tpu.memory_space<vmem>>, %arg13: memref<2x10xf32, #tpu.memory_space<vmem>>) attributes {dimension_semantics = [#tpu.dimension_semantics<arbitrary>], iteration_bounds = array<i64: 1>, scalar_prefetch = 0 : i64, scratch_operands = 0 : i64, tpu.core_type = #tpu.core_type<tc>, window_params = [{pipeline_mode = #tpu.pipeline_mode<synchronous>, transform_indices = @transform_0, window_bounds = array<i64: 1, 128>}, {pipeline_mode = #tpu.pipeline_mode<synchronous>, transform_indices = @transform_1, window_bounds = array<i64: 8, 1024>}, {pipeline_mode = #tpu.pipeline_mode<synchronous>, transform_indices = @transform_2, window_bounds = array<i64: 1024, 128>}, {pipeline_mode = #tpu.pipeline_mode<synchronous>, transform_indices = @transform_3, window_bounds = array<i64: 1024, 128>}, {pipeline_mode = #tpu.pipeline_mode<synchronous>, transform_indices = @transform_4, window_bounds = array<i64: 128, 128>}, {pipeline_mode = #tpu.pipeline_mode<synchronous>, transform_indices = @transform_5, window_bounds = array<i64: 32, 32>}, {pipeline_mode = #tpu.pipeline_mode<synchronous>, transform_indices = @transform_6, window_bounds = array<i64: 1, 32>}, {pipeline_mode = #tpu.pipeline_mode<synchronous>, transform_indices = @transform_7, window_bounds = array<i64: 32, 640>}, {pipeline_mode = #tpu.pipeline_mode<synchronous>, transform_indices = @transform_8, window_bounds = array<i64: 128, 640>}, {pipeline_mode = #tpu.pipeline_mode<synchronous>, transform_indices = @transform_9, window_bounds = array<i64: 2, 128>}, {pipeline_mode = #tpu.pipeline_mode<synchronous>, transform_indices = @transform_10, window_bounds = array<i64: 640, 10>}, {pipeline_mode = #tpu.pipeline_mode<synchronous>, transform_indices = @transform_11, window_bounds = array<i64: 1, 10>}, {pipeline_mode = #tpu.pipeline_mode<synchronous>, transform_indices = @transform_12, window_bounds = array<i64: 2, 10>}]} {
    %c0 = arith.constant 0 : index
    %c0_0 = arith.constant 0 : index
    %0 = vector.load %arg1[%c0, %c0_0] : memref<1x128xf32, #tpu.memory_space<vmem>>, vector<1x128xf32>
    %1 = tpu.concatenate %0, %0, %0, %0, %0, %0, %0, %0 in 1 : vector<1x128xf32>, vector<1x128xf32>, vector<1x128xf32>, vector<1x128xf32>, vector<1x128xf32>, vector<1x128xf32>, vector<1x128xf32>, vector<1x128xf32> -> vector<1x1024xf32>
    %c0_1 = arith.constant 0 : index
    %c0_2 = arith.constant 0 : index
    %2 = vector.load %arg2[%c0_1, %c0_2] : memref<8x1024xf32, #tpu.memory_space<vmem>>, vector<8x1024xf32>
    %3 = vector.broadcast %1 : vector<1x1024xf32> to vector<8x1024xf32>
    %4 = arith.mulf %2, %3 : vector<8x1024xf32>
    %c0_3 = arith.constant 0 : index
    %c0_4 = arith.constant 0 : index
    %5 = vector.load %arg3[%c0_3, %c0_4] : memref<1024x128xf32, #tpu.memory_space<vmem>>, vector<1024x128xf32>
    %cst = arith.constant dense<0.000000e+00> : vector<8x128xf32>
    %6 = tpu.matmul %4, %5, %cst {dimension_numbers = #tpu.dot_dimension_numbers<[1], [0], [0], [1], [0, 0, 1, 1], [], []>} : vector<8x1024xf32>, vector<1024x128xf32>, vector<8x128xf32> -> vector<8x128xf32>
    %c0_5 = arith.constant 0 : index
    %c0_6 = arith.constant 0 : index
    %7 = vector.load %arg4[%c0_5, %c0_6] : memref<1024x128xf32, #tpu.memory_space<vmem>>, vector<1024x128xf32>
    %cst_7 = arith.constant dense<0.000000e+00> : vector<8x128xf32>
    %8 = tpu.matmul %4, %7, %cst_7 {dimension_numbers = #tpu.dot_dimension_numbers<[1], [0], [0], [1], [0, 0, 1, 1], [], []>} : vector<8x1024xf32>, vector<1024x128xf32>, vector<8x128xf32> -> vector<8x128xf32>
    %c0_8 = arith.constant 0 : index
    %c0_9 = arith.constant 0 : index
    %9 = vector.load %arg5[%c0_8, %c0_9] : memref<128x128xf32, #tpu.memory_space<vmem>>, vector<128x128xf32>
    %cst_10 = arith.constant dense<0.000000e+00> : vector<8x128xf32>
    %10 = tpu.matmul %8, %9, %cst_10 {dimension_numbers = #tpu.dot_dimension_numbers<[1], [0], [0], [1], [0, 0, 1, 1], [], []>} : vector<8x128xf32>, vector<128x128xf32>, vector<8x128xf32> -> vector<8x128xf32>
    %11 = arith.subf %10, %6 : vector<8x128xf32>
    %cst_11 = arith.constant dense<0.000000e+00> : vector<8x128xf32>
    %12 = tpu.matmul %11, %9, %cst_11 {dimension_numbers = #tpu.dot_dimension_numbers<[1], [0], [0], [1], [0, 0, 1, 1], [], []>} : vector<8x128xf32>, vector<128x128xf32>, vector<8x128xf32> -> vector<8x128xf32>
    %13 = arith.subf %12, %8 : vector<8x128xf32>
    %14 = tpu.concatenate %6, %8, %11, %13 in 0 : vector<8x128xf32>, vector<8x128xf32>, vector<8x128xf32>, vector<8x128xf32> -> vector<32x128xf32>
    %c0_12 = arith.constant 0 : index
    %c0_13 = arith.constant 0 : index
    %15 = vector.load %arg6[%c0_12, %c0_13] : memref<32x32xf32, #tpu.memory_space<vmem>>, vector<32x32xf32>
    %cst_14 = arith.constant dense<0.000000e+00> : vector<128x32xf32>
    %16 = tpu.matmul %14, %15, %cst_14 {dimension_numbers = #tpu.dot_dimension_numbers<[0], [0], [1], [1], [0, 1, 1, 1], [], []>} : vector<32x128xf32>, vector<32x32xf32>, vector<128x32xf32> -> vector<128x32xf32>
    %c0_15 = arith.constant 0 : index
    %c0_16 = arith.constant 0 : index
    %17 = vector.load %arg7[%c0_15, %c0_16] : memref<1x32xf32, #tpu.memory_space<vmem>>, vector<1x32xf32>
    %18 = vector.broadcast %17 : vector<1x32xf32> to vector<128x32xf32>
    %19 = arith.addf %16, %18 : vector<128x32xf32>
    %cst_17 = arith.constant 0.000000e+00 : f32
    %20 = vector.broadcast %cst_17 : f32 to vector<128x32xf32>
    %21 = arith.maximumf %19, %20 : vector<128x32xf32>
    %c0_18 = arith.constant 0 : index
    %c0_19 = arith.constant 0 : index
    %22 = vector.load %arg8[%c0_18, %c0_19] : memref<32x640xf32, #tpu.memory_space<vmem>>, vector<32x640xf32>
    %cst_20 = arith.constant dense<0.000000e+00> : vector<128x640xf32>
    %23 = tpu.matmul %21, %22, %cst_20 {dimension_numbers = #tpu.dot_dimension_numbers<[1], [0], [0], [1], [0, 0, 1, 1], [], []>} : vector<128x32xf32>, vector<32x640xf32>, vector<128x640xf32> -> vector<128x640xf32>
    %c0_21 = arith.constant 0 : index
    %c0_22 = arith.constant 0 : index
    %24 = vector.load %arg10[%c0_21, %c0_22] : memref<2x128xf32, #tpu.memory_space<vmem>>, vector<2x128xf32>
    %c0_23 = arith.constant 0 : index
    %c0_24 = arith.constant 0 : index
    %25 = vector.load %arg9[%c0_23, %c0_24] : memref<128x640xf32, #tpu.memory_space<vmem>>, vector<128x640xf32>
    %26 = arith.mulf %23, %25 : vector<128x640xf32>
    %cst_25 = arith.constant dense<0.000000e+00> : vector<2x640xf32>
    %27 = tpu.matmul %24, %26, %cst_25 {dimension_numbers = #tpu.dot_dimension_numbers<[1], [0], [0], [1], [0, 0, 1, 1], [], []>} : vector<2x128xf32>, vector<128x640xf32>, vector<2x640xf32> -> vector<2x640xf32>
    %c0_26 = arith.constant 0 : index
    %c0_27 = arith.constant 0 : index
    %28 = vector.load %arg11[%c0_26, %c0_27] : memref<640x10xf32, #tpu.memory_space<vmem>>, vector<640x10xf32>
    %cst_28 = arith.constant dense<0.000000e+00> : vector<2x10xf32>
    %29 = tpu.matmul %27, %28, %cst_28 {dimension_numbers = #tpu.dot_dimension_numbers<[1], [0], [0], [1], [0, 0, 1, 1], [], []>} : vector<2x640xf32>, vector<640x10xf32>, vector<2x10xf32> -> vector<2x10xf32>
    %c0_29 = arith.constant 0 : index
    %c0_30 = arith.constant 0 : index
    %30 = vector.load %arg12[%c0_29, %c0_30] : memref<1x10xf32, #tpu.memory_space<vmem>>, vector<1x10xf32>
    %31 = vector.broadcast %30 : vector<1x10xf32> to vector<2x10xf32>
    %32 = arith.addf %29, %31 : vector<2x10xf32>
    %cst_31 = arith.constant dense<0xFF800000> : vector<2xf32>
    %33 = vector.multi_reduction <maximumf>, %32, %cst_31 [1] : vector<2x10xf32> to vector<2xf32>
    %34 = vector.shape_cast %33 : vector<2xf32> to vector<2x1xf32>
    %35 = vector.broadcast %34 : vector<2x1xf32> to vector<2x10xf32>
    %36 = arith.subf %32, %35 : vector<2x10xf32>
    %37 = math.exp %36 : vector<2x10xf32>
    %cst_32 = arith.constant dense<0.000000e+00> : vector<2xf32>
    %38 = vector.multi_reduction <add>, %37, %cst_32 [1] : vector<2x10xf32> to vector<2xf32>
    %39 = vector.shape_cast %38 : vector<2xf32> to vector<2x1xf32>
    %40 = math.log %39 : vector<2x1xf32>
    %41 = arith.addf %40, %34 : vector<2x1xf32>
    %42 = vector.broadcast %41 : vector<2x1xf32> to vector<2x10xf32>
    %43 = arith.subf %32, %42 : vector<2x10xf32>
    %c0_33 = arith.constant 0 : index
    %c0_34 = arith.constant 0 : index
    %44 = vector.load %arg13[%c0_33, %c0_34] : memref<2x10xf32, #tpu.memory_space<vmem>>, vector<2x10xf32>
    tpu.vector_store %arg13[%c0_33, %c0_34], %43 {strides = array<i32>} : memref<2x10xf32, #tpu.memory_space<vmem>>, vector<2x10xf32>,
    return
  }
  func.func @transform_0(%arg0: i32) -> (i32, i32) {
    %c0_i32 = arith.constant 0 : i32
    %c0_i32_0 = arith.constant 0 : i32
    %c0_i32_1 = arith.constant 0 : i32
    return %c0_i32, %c0_i32_0 : i32, i32
  }
  func.func @transform_1(%arg0: i32) -> (i32, i32) {
    %c0_i32 = arith.constant 0 : i32
    %c0_i32_0 = arith.constant 0 : i32
    %c0_i32_1 = arith.constant 0 : i32
    return %c0_i32, %c0_i32_0 : i32, i32
  }
  func.func @transform_2(%arg0: i32) -> (i32, i32) {
    %c0_i32 = arith.constant 0 : i32
    %c0_i32_0 = arith.constant 0 : i32
    %c0_i32_1 = arith.constant 0 : i32
    return %c0_i32, %c0_i32_0 : i32, i32
  }
  func.func @transform_3(%arg0: i32) -> (i32, i32) {
    %c0_i32 = arith.constant 0 : i32
    %c0_i32_0 = arith.constant 0 : i32
    %c0_i32_1 = arith.constant 0 : i32
    return %c0_i32, %c0_i32_0 : i32, i32
  }
  func.func @transform_4(%arg0: i32) -> (i32, i32) {
    %c0_i32 = arith.constant 0 : i32
    %c0_i32_0 = arith.constant 0 : i32
    %c0_i32_1 = arith.constant 0 : i32
    return %c0_i32, %c0_i32_0 : i32, i32
  }
  func.func @transform_5(%arg0: i32) -> (i32, i32) {
    %c0_i32 = arith.constant 0 : i32
    %c0_i32_0 = arith.constant 0 : i32
    %c0_i32_1 = arith.constant 0 : i32
    return %c0_i32, %c0_i32_0 : i32, i32
  }
  func.func @transform_6(%arg0: i32) -> (i32, i32) {
    %c0_i32 = arith.constant 0 : i32
    %c0_i32_0 = arith.constant 0 : i32
    %c0_i32_1 = arith.constant 0 : i32
    return %c0_i32, %c0_i32_0 : i32, i32
  }
  func.func @transform_7(%arg0: i32) -> (i32, i32) {
    %c0_i32 = arith.constant 0 : i32
    %c0_i32_0 = arith.constant 0 : i32
    %c0_i32_1 = arith.constant 0 : i32
    return %c0_i32, %c0_i32_0 : i32, i32
  }
  func.func @transform_8(%arg0: i32) -> (i32, i32) {
    %c0_i32 = arith.constant 0 : i32
    %c0_i32_0 = arith.constant 0 : i32
    %c0_i32_1 = arith.constant 0 : i32
    return %c0_i32, %c0_i32_0 : i32, i32
  }
  func.func @transform_9(%arg0: i32) -> (i32, i32) {
    %c0_i32 = arith.constant 0 : i32
    %c0_i32_0 = arith.constant 0 : i32
    %c0_i32_1 = arith.constant 0 : i32
    return %c0_i32, %c0_i32_0 : i32, i32
  }
  func.func @transform_10(%arg0: i32) -> (i32, i32) {
    %c0_i32 = arith.constant 0 : i32
    %c0_i32_0 = arith.constant 0 : i32
    %c0_i32_1 = arith.constant 0 : i32
    return %c0_i32, %c0_i32_0 : i32, i32
  }
  func.func @transform_11(%arg0: i32) -> (i32, i32) {
    %c0_i32 = arith.constant 0 : i32
    %c0_i32_0 = arith.constant 0 : i32
    %c0_i32_1 = arith.constant 0 : i32
    return %c0_i32, %c0_i32_0 : i32, i32
  }
  func.func @transform_12(%arg0: i32) -> (i32, i32) {
    %c0_i32 = arith.constant 0 : i32
    %c0_i32_0 = arith.constant 0 : i32
    %c0_i32_1 = arith.constant 0 : i32
    return %c0_i32, %c0_i32_0 : i32, i32
  }
}

</mosaic_0001>

<bundles_post_ra>
// kernel: net_gcn_basic_forward.1
= control target key start
LH: loop header
LB: loop body
LE: loop exit
PB: predicated region body
PF: predicated region fallthrough
CT: control target
= control target key end

     0   :  { %17 = vsyncpa [#allocation3], 0  ;;  %s3141_s0 = inlined_call_operand.vmem [shape: f32[1,128], index: 0, kind: input, shape index: {}]   ;;  %s3142_s1 = inlined_call_operand.vmem [shape: f32[8,1024], index: 1, kind: input, shape index: {}]   ;;  %s3143_s2 = inlined_call_operand.hbm [shape: f32[1024,128], index: 2, kind: input, shape index: {}]   ;;  %s3144_s3 = inlined_call_operand.hbm [shape: f32[1024,128], index: 3, kind: input, shape index: {}]   ;;  %s3145_s4 = inlined_call_operand.hbm [shape: f32[128,128], index: 4, kind: input, shape index: {}]   ;;  %s3146_s5 = inlined_call_operand.hbm [shape: f32[32,32], index: 5, kind: input, shape index: {}]   ;;  %s3147_s6 = inlined_call_operand.vmem [shape: f32[1,32], index: 6, kind: input, shape index: {}]   ;;  %s3148_s7 = inlined_call_operand.hbm [shape: f32[32,640], index: 7, kind: input, shape index: {}]   ;;  %s3149_s8 = inlined_call_operand.vmem [shape: f32[128,640], index: 8, kind: input, shape index: {}]   ;;  %s3150_s9 = inlined_call_operand.vmem [shape: f32[2,128], index: 9, kind: input, shape index: {}]   ;;  %s3151_s10 = inlined_call_operand.vmem [shape: f32[640,10], index: 10, kind: input, shape index: {}]   ;;  %s3152_s11 = inlined_call_operand.vmem [shape: f32[1,10], index: 11, kind: input, shape index: {}]   ;;  %s3153_s12 = inlined_call_operand.hbm [shape: f32[2,10], index: 12, kind: output, shape index: {}]  }
   0x1   :  { %18 = vsyncpa [#allocation6], 0 }
   0x2   :  { %19 = vsyncpa [#allocation9], 0 }
   0x3   :  { %20 = vsyncpa [#allocation4], 0  ;;  %s42_s23 = sshll.u32 %s3144_s3, 4  ;;  %s2080_s24 = smov [#allocation5]   ;;  %s43_s23 = int_to_ptr.hbm [resolvable:$true] %s42_s23 }
   0x4   :  { %s44_s25 = sshll.u32 %s2080_s24, 4  ;;  %s68_s28 = sshll.u32 %s3146_s5, 4  ;;  %s45_s25 = int_to_ptr.vmem [resolvable:$true] %s44_s25  ;;  %s69_s28 = int_to_ptr.hbm [resolvable:$true] %s68_s28 }
   0x5   :  { %s2081_s29 = smov 128   ;;  %s2082_s30 = smov 8  }
   0x6   :  { %50 = dma.hbm_to_vmem [thread:$0]  %s43_s23, 16384, %s45_s25, [#allocation6], %s2081_s29, %s2081_s29, %s2082_s30  }
   0x7   :  { %s2083_s13 = smov [#allocation8]   ;;  %s29_s17 = sshll.u32 %s3143_s2, 4  ;;  %s30_s17 = int_to_ptr.hbm [resolvable:$true] %s29_s17 }
   0x8   :  { %s70_s14 = sshll.u32 %s2083_s13, 4  ;;  %s55_s19 = sshll.u32 %s3145_s4, 4  ;;  %s71_s14 = int_to_ptr.vmem [resolvable:$true] %s70_s14  ;;  %s56_s19 = int_to_ptr.hbm [resolvable:$true] %s55_s19 }
   0x9   :  { %76 = dma.hbm_to_vmem [thread:$0]  %s69_s28, 512, %s71_s14, [#allocation9], %s2081_s29, %s2081_s29, %s2082_s30  }
   0xa   :  { %s2084_s20 = smov [#allocation2]   ;;  %s2085_s5 = smov [#allocation7]  }
   0xb   :  { %s31_s21 = sshll.u32 %s2084_s20, 4  ;;  %s57_s22 = sshll.u32 %s2085_s5, 4  ;;  %s32_s21 = int_to_ptr.vmem [resolvable:$true] %s31_s21  ;;  %s58_s22 = int_to_ptr.vmem [resolvable:$true] %s57_s22 }
   0xc   :  { %37 = dma.hbm_to_vmem [thread:$0]  %s30_s17, 16384, %s32_s21, [#allocation3], %s2081_s29, %s2081_s29, %s2082_s30  }
   0xd   :  { %s83_s25 = sshll.u32 %s3148_s7, 4  ;;  %s2086_s2 = smov [#allocation10]   ;;  %s84_s25 = int_to_ptr.hbm [resolvable:$true] %s83_s25 }
   0xe   :  { %63 = dma.hbm_to_vmem [thread:$0]  %s56_s19, 2048, %s58_s22, [#allocation6], %s2081_s29, %s2081_s29, %s2082_s30  }
   0xf   :  { %s85_s26 = sshll.u32 %s2086_s2, 4  ;;  %s2087_s27 = smov 640   ;;  %s86_s26 = int_to_ptr.vmem [resolvable:$true] %s85_s26 }
  0x10   :  { %s2088_s28 = smov 40  }
  0x11   :  { %91 = dma.hbm_to_vmem [thread:$0]  %s84_s25, 2560, %s86_s26, [#allocation9], %s2087_s27, %s2087_s27, %s2088_s28  }
  0x12   :  { %2072 = dma.done.wait [#allocation3], 16384  }
  0x13   :  { %2073 = vsyncadd [#allocation3], 4294950912 }
  0x14   :  { %2074 = dma.done.wait [#allocation6], 18432  }
  0x15   :  { %2075 = vsyncadd [#allocation6], 4294948864 }
  0x16   :  { %2076 = dma.done.wait [#allocation9], 3072  }
  0x17   :  { %2077 = vsyncadd [#allocation9], 4294964224  ;;  %v153_v0 = vld [vmem:[#allocation2 + $0x78] sm:$0xff]  ;;  %v152_v2 = vld [vmem:[#allocation2 + $0x70] sm:$0xff]  ;;  %vm812_vm0 = vcmask 261120   ;;  %vm1780_vm1 = vcmask 74752  }
  0x18   :  { %v185_v1 = vld [vmem:[#allocation2 + $0x178] sm:$0xff]  ;;  %266 = vmatpush.msra.mxu0 %v153_v0  ;;  %v184_v4 = vld [vmem:[#allocation2 + $0x170] sm:$0xff]  ;;  %v151_v6 = vld [vmem:[#allocation2 + $0x68] sm:$0xff]  ;;  %s1802_s26 = sshll.u32 %s3153_s12, 4  ;;  %s1803_s26 = int_to_ptr.hbm [resolvable:$true] %s1802_s26 }
  0x19   :  { %306 = vmatpush.msra.mxu2 %v185_v1  ;;  %v169_v3 = vld [vmem:[#allocation2 + $0xf8] sm:$0xff]  ;;  %v168_v7 = vld [vmem:[#allocation2 + $0xf0] sm:$0xff]  ;;  %v183_v8 = vld [vmem:[#allocation2 + $0x168] sm:$0xff] }
  0x1a   :  { %v201_v5 = vld [vmem:[#allocation2 + $0x1f8] sm:$0xff]  ;;  %286 = vmatpush.msra.mxu1 %v169_v3  ;;  %267 = vmatpush.msra.mxu0 %v152_v2  ;;  %v200_v9 = vld [vmem:[#allocation2 + $0x1f0] sm:$0xff]  ;;  %v167_v10 = vld [vmem:[#allocation2 + $0xe8] sm:$0xff] }
  0x1b   :  { %326 = vmatpush.msra.mxu3 %v201_v5  ;;  %307 = vmatpush.msra.mxu2 %v184_v4  ;;  %v150_v11 = vld [vmem:[#allocation2 + $0x60] sm:$0xff]  ;;  %v199_v13 = vld [vmem:[#allocation2 + $0x1e8] sm:$0xff]  ;;  %v149_v16 = vld [vmem:[#allocation2 + $0x58] sm:$0xff] }
  0x1c   :  { %287 = vmatpush.msra.mxu1 %v168_v7  ;;  %v182_v12 = vld [vmem:[#allocation2 + $0x160] sm:$0xff]  ;;  %268 = vmatpush.msra.mxu0 %v151_v6  ;;  %v181_v17 = vld [vmem:[#allocation2 + $0x158] sm:$0xff]  ;;  %v148_v20 = vld [vmem:[#allocation2 + $0x50] sm:$0xff] }
  0x1d   :  { %327 = vmatpush.msra.mxu3 %v200_v9  ;;  %308 = vmatpush.msra.mxu2 %v183_v8  ;;  %v166_v14 = vld [vmem:[#allocation2 + $0xe0] sm:$0xff]  ;;  %v165_v18 = vld [vmem:[#allocation2 + $0xd8] sm:$0xff]  ;;  %v180_v21 = vld [vmem:[#allocation2 + $0x150] sm:$0xff] }
  0x1e   :  { %v198_v15 = vld [vmem:[#allocation2 + $0x1e0] sm:$0xff]  ;;  %288 = vmatpush.msra.mxu1 %v167_v10  ;;  %269 = vmatpush.msra.mxu0 %v150_v11  ;;  %v197_v19 = vld [vmem:[#allocation2 + $0x1d8] sm:$0xff]  ;;  %v164_v22 = vld [vmem:[#allocation2 + $0xd0] sm:$0xff] }
  0x1f   :  { %328 = vmatpush.msra.mxu3 %v199_v13  ;;  %309 = vmatpush.msra.mxu2 %v182_v12  ;;  %v196_v23 = vld [vmem:[#allocation2 + $0x1d0] sm:$0xff]  ;;  %v147_v24 = vld [vmem:[#allocation2 + $0x48] sm:$0xff]  ;;  %v146_v28 = vld [vmem:[#allocation2 + $0x40] sm:$0xff] }
  0x20   :  { %289 = vmatpush.msra.mxu1 %v166_v14  ;;  %270 = vmatpush.msra.mxu0 %v149_v16  ;;  %v179_v25 = vld [vmem:[#allocation2 + $0x148] sm:$0xff]  ;;  %v178_v29 = vld [vmem:[#allocation2 + $0x140] sm:$0xff]  ;;  %v145_v32 = vld [vmem:[#allocation2 + $0x38] sm:$0xff] }
  0x21   :  { %329 = vmatpush.msra.mxu3 %v198_v15  ;;  %310 = vmatpush.msra.mxu2 %v181_v17  ;;  %v163_v26 = vld [vmem:[#allocation2 + $0xc8] sm:$0xff]  ;;  %v162_v30 = vld [vmem:[#allocation2 + $0xc0] sm:$0xff]  ;;  %v177_v33 = vld [vmem:[#allocation2 + $0x138] sm:$0xff] }
  0x22   :  { %290 = vmatpush.msra.mxu1 %v165_v18  ;;  %271 = vmatpush.msra.mxu0 %v148_v20  ;;  %v195_v27 = vld [vmem:[#allocation2 + $0x1c8] sm:$0xff]  ;;  %v194_v31 = vld [vmem:[#allocation2 + $0x1c0] sm:$0xff]  ;;  %v161_v34 = vld [vmem:[#allocation2 + $0xb8] sm:$0xff] }
  0x23   :  { %330 = vmatpush.msra.mxu3 %v197_v19  ;;  %311 = vmatpush.msra.mxu2 %v180_v21  ;;  %v193_v35 = vld [vmem:[#allocation2 + $0x1b8] sm:$0xff]  ;;  %v144_v36 = vld [vmem:[#allocation2 + $0x30] sm:$0xff]  ;;  %v143_v40 = vld [vmem:[#allocation2 + $0x28] sm:$0xff] }
  0x24   :  { %291 = vmatpush.msra.mxu1 %v164_v22  ;;  %272 = vmatpush.msra.mxu0 %v147_v24  ;;  %v176_v37 = vld [vmem:[#allocation2 + $0x130] sm:$0xff]  ;;  %v175_v41 = vld [vmem:[#allocation2 + $0x128] sm:$0xff]  ;;  %v142_v44 = vld [vmem:[#allocation2 + $0x20] sm:$0xff] }
  0x25   :  { %331 = vmatpush.msra.mxu3 %v196_v23  ;;  %312 = vmatpush.msra.mxu2 %v179_v25  ;;  %v160_v38 = vld [vmem:[#allocation2 + $0xb0] sm:$0xff]  ;;  %v159_v42 = vld [vmem:[#allocation2 + $0xa8] sm:$0xff]  ;;  %v174_v45 = vld [vmem:[#allocation2 + $0x120] sm:$0xff] }
  0x26   :  { %292 = vmatpush.msra.mxu1 %v163_v26  ;;  %273 = vmatpush.msra.mxu0 %v146_v28  ;;  %v192_v39 = vld [vmem:[#allocation2 + $0x1b0] sm:$0xff]  ;;  %v191_v43 = vld [vmem:[#allocation2 + $0x1a8] sm:$0xff]  ;;  %v158_v46 = vld [vmem:[#allocation2 + $0xa0] sm:$0xff] }
  0x27   :  { %332 = vmatpush.msra.mxu3 %v195_v27  ;;  %313 = vmatpush.msra.mxu2 %v178_v29  ;;  %v190_v47 = vld [vmem:[#allocation2 + $0x1a0] sm:$0xff]  ;;  %v141_v48 = vld [vmem:[#allocation2 + $0x18] sm:$0xff]  ;;  %v140_v52 = vld [vmem:[#allocation2 + $0x10] sm:$0xff] }
  0x28   :  { %293 = vmatpush.msra.mxu1 %v162_v30  ;;  %274 = vmatpush.msra.mxu0 %v145_v32  ;;  %v173_v49 = vld [vmem:[#allocation2 + $0x118] sm:$0xff]  ;;  %v172_v53 = vld [vmem:[#allocation2 + $0x110] sm:$0xff]  ;;  %v139_v56 = vld [vmem:[#allocation2 + $0x8] sm:$0xff] }
  0x29   :  { %333 = vmatpush.msra.mxu3 %v194_v31  ;;  %314 = vmatpush.msra.mxu2 %v177_v33  ;;  %v157_v50 = vld [vmem:[#allocation2 + $0x98] sm:$0xff]  ;;  %v156_v54 = vld [vmem:[#allocation2 + $0x90] sm:$0xff]  ;;  %v171_v57 = vld [vmem:[#allocation2 + $0x108] sm:$0xff] }
  0x2a   :  { %294 = vmatpush.msra.mxu1 %v161_v34  ;;  %275 = vmatpush.msra.mxu0 %v144_v36  ;;  %v189_v51 = vld [vmem:[#allocation2 + $0x198] sm:$0xff]  ;;  %v188_v55 = vld [vmem:[#allocation2 + $0x190] sm:$0xff]  ;;  %v155_v58 = vld [vmem:[#allocation2 + $0x88] sm:$0xff] }
  0x2b   :  { %334 = vmatpush.msra.mxu3 %v193_v35  ;;  %315 = vmatpush.msra.mxu2 %v176_v37  ;;  %v187_v59 = vld [vmem:[#allocation2 + $0x188] sm:$0xff]  ;;  %v138_v60 = vld [vmem:[#allocation2] sm:$0xff]  ;;  %v217_v62 = vld [vmem:[#allocation2 + $0x278] sm:$0xff] }
  0x2c   :  { %295 = vmatpush.msra.mxu1 %v160_v38  ;;  %276 = vmatpush.msra.mxu0 %v143_v40  ;;  %v170_v61 = vld [vmem:[#allocation2 + $0x100] sm:$0xff]  ;;  %v249_v63 = vld [vmem:[#allocation2 + $0x378] sm:$0xff]  ;;  %v216_v2 = vld [vmem:[#allocation2 + $0x270] sm:$0xff] }
  0x2d   :  { %335 = vmatpush.msra.mxu3 %v192_v39  ;;  %316 = vmatpush.msra.mxu2 %v175_v41  ;;  %v154_v0 = vld [vmem:[#allocation2 + $0x80] sm:$0xff]  ;;  %v233_v3 = vld [vmem:[#allocation2 + $0x2f8] sm:$0xff]  ;;  %v248_v4 = vld [vmem:[#allocation2 + $0x370] sm:$0xff] }
  0x2e   :  { %296 = vmatpush.msra.mxu1 %v159_v42  ;;  %277 = vmatpush.msra.mxu0 %v142_v44  ;;  %v186_v1 = vld [vmem:[#allocation2 + $0x180] sm:$0xff]  ;;  %v265_v5 = vld [vmem:[#allocation2 + $0x3f8] sm:$0xff]  ;;  %v215_v6 = vld [vmem:[#allocation2 + $0x268] sm:$0xff] }
  0x2f   :  { %336 = vmatpush.msra.mxu3 %v191_v43  ;;  %317 = vmatpush.msra.mxu2 %v174_v45  ;;  %v232_v7 = vld [vmem:[#allocation2 + $0x2f0] sm:$0xff]  ;;  %v247_v8 = vld [vmem:[#allocation2 + $0x368] sm:$0xff]  ;;  %v214_v10 = vld [vmem:[#allocation2 + $0x260] sm:$0xff] }
  0x30   :  { %297 = vmatpush.msra.mxu1 %v158_v46  ;;  %278 = vmatpush.msra.mxu0 %v141_v48  ;;  %v264_v9 = vld [vmem:[#allocation2 + $0x3f0] sm:$0xff]  ;;  %v231_v11 = vld [vmem:[#allocation2 + $0x2e8] sm:$0xff]  ;;  %v246_v12 = vld [vmem:[#allocation2 + $0x360] sm:$0xff] }
  0x31   :  { %337 = vmatpush.msra.mxu3 %v190_v47  ;;  %318 = vmatpush.msra.mxu2 %v173_v49  ;;  %v263_v13 = vld [vmem:[#allocation2 + $0x3e8] sm:$0xff]  ;;  %v213_v14 = vld [vmem:[#allocation2 + $0x258] sm:$0xff]  ;;  %v230_v15 = vld [vmem:[#allocation2 + $0x2e0] sm:$0xff] }
  0x32   :  { %298 = vmatpush.msra.mxu1 %v157_v50  ;;  %279 = vmatpush.msra.mxu0 %v140_v52  ;;  %v245_v16 = vld [vmem:[#allocation2 + $0x358] sm:$0xff]  ;;  %v262_v17 = vld [vmem:[#allocation2 + $0x3e0] sm:$0xff]  ;;  %v212_v18 = vld [vmem:[#allocation2 + $0x250] sm:$0xff] }
  0x33   :  { %338 = vmatpush.msra.mxu3 %v189_v51  ;;  %319 = vmatpush.msra.mxu2 %v172_v53  ;;  %v229_v19 = vld [vmem:[#allocation2 + $0x2d8] sm:$0xff]  ;;  %v244_v20 = vld [vmem:[#allocation2 + $0x350] sm:$0xff]  ;;  %v211_v22 = vld [vmem:[#allocation2 + $0x248] sm:$0xff] }
  0x34   :  { %299 = vmatpush.msra.mxu1 %v156_v54  ;;  %280 = vmatpush.msra.mxu0 %v139_v56  ;;  %v261_v21 = vld [vmem:[#allocation2 + $0x3d8] sm:$0xff]  ;;  %v228_v23 = vld [vmem:[#allocation2 + $0x2d0] sm:$0xff]  ;;  %v243_v24 = vld [vmem:[#allocation2 + $0x348] sm:$0xff] }
  0x35   :  { %339 = vmatpush.msra.mxu3 %v188_v55  ;;  %320 = vmatpush.msra.mxu2 %v171_v57  ;;  %v260_v25 = vld [vmem:[#allocation2 + $0x3d0] sm:$0xff]  ;;  %v210_v26 = vld [vmem:[#allocation2 + $0x240] sm:$0xff]  ;;  %v227_v27 = vld [vmem:[#allocation2 + $0x2c8] sm:$0xff] }
  0x36   :  { %300 = vmatpush.msra.mxu1 %v155_v58  ;;  %281 = vmatpush.msra.mxu0 %v138_v60  ;;  %v242_v28 = vld [vmem:[#allocation2 + $0x340] sm:$0xff]  ;;  %v259_v29 = vld [vmem:[#allocation2 + $0x3c8] sm:$0xff]  ;;  %v209_v30 = vld [vmem:[#allocation2 + $0x238] sm:$0xff] }
  0x37   :  { %340 = vmatpush.msra.mxu3 %v187_v59  ;;  %321 = vmatpush.msra.mxu2 %v170_v61  ;;  %v226_v31 = vld [vmem:[#allocation2 + $0x2c0] sm:$0xff]  ;;  %v241_v32 = vld [vmem:[#allocation2 + $0x338] sm:$0xff]  ;;  %v208_v34 = vld [vmem:[#allocation2 + $0x230] sm:$0xff] }
  0x38   :  { %346 = vmatpush.msrb.mxu0 %v217_v62  ;;  %301 = vmatpush.msra.mxu1 %v154_v0  ;;  %v258_v33 = vld [vmem:[#allocation2 + $0x3c0] sm:$0xff]  ;;  %v225_v35 = vld [vmem:[#allocation2 + $0x2b8] sm:$0xff]  ;;  %v240_v36 = vld [vmem:[#allocation2 + $0x330] sm:$0xff] }
  0x39   :  { %386 = vmatpush.msrb.mxu2 %v249_v63  ;;  %341 = vmatpush.msra.mxu3 %v186_v1  ;;  %v257_v37 = vld [vmem:[#allocation2 + $0x3b8] sm:$0xff]  ;;  %v207_v38 = vld [vmem:[#allocation2 + $0x228] sm:$0xff]  ;;  %v224_v39 = vld [vmem:[#allocation2 + $0x2b0] sm:$0xff] }
  0x3a   :  { %347 = vmatpush.msrb.mxu0 %v216_v2  ;;  %366 = vmatpush.msrb.mxu1 %v233_v3  ;;  %v239_v40 = vld [vmem:[#allocation2 + $0x328] sm:$0xff]  ;;  %v256_v41 = vld [vmem:[#allocation2 + $0x3b0] sm:$0xff]  ;;  %v206_v42 = vld [vmem:[#allocation2 + $0x220] sm:$0xff] }
  0x3b   :  { %387 = vmatpush.msrb.mxu2 %v248_v4  ;;  %406 = vmatpush.msrb.mxu3 %v265_v5  ;;  %v223_v43 = vld [vmem:[#allocation2 + $0x2a8] sm:$0xff]  ;;  %v238_v44 = vld [vmem:[#allocation2 + $0x320] sm:$0xff]  ;;  %v205_v46 = vld [vmem:[#allocation2 + $0x218] sm:$0xff] }
  0x3c   :  { %348 = vmatpush.msrb.mxu0 %v215_v6  ;;  %367 = vmatpush.msrb.mxu1 %v232_v7  ;;  %v255_v45 = vld [vmem:[#allocation2 + $0x3a8] sm:$0xff]  ;;  %v222_v47 = vld [vmem:[#allocation2 + $0x2a0] sm:$0xff]  ;;  %v237_v48 = vld [vmem:[#allocation2 + $0x318] sm:$0xff] }
  0x3d   :  { %388 = vmatpush.msrb.mxu2 %v247_v8  ;;  %407 = vmatpush.msrb.mxu3 %v264_v9  ;;  %v254_v49 = vld [vmem:[#allocation2 + $0x3a0] sm:$0xff]  ;;  %v204_v51 = vld [vmem:[#allocation2 + $0x210] sm:$0xff]  ;;  %v221_v52 = vld [vmem:[#allocation2 + $0x298] sm:$0xff] }
  0x3e   :  { %349 = vmatpush.msrb.mxu0 %v214_v10  ;;  %368 = vmatpush.msrb.mxu1 %v231_v11  ;;  %v2173_v50 = vld [vmem:[%s3141_s0] ss:$0 sm:$0xff]  ;;  %v123_v53 = vld [vmem:[%s3142_s1 + $0x10] sm:$0xff]  ;;  %v253_v55 = vld [vmem:[#allocation2 + $0x398] sm:$0xff] }
  0x3f   :  { %389 = vmatpush.msrb.mxu2 %v246_v12  ;;  %408 = vmatpush.msrb.mxu3 %v263_v13  ;;  %v236_v54 = vld [vmem:[#allocation2 + $0x310] sm:$0xff]  ;;  %v203_v56 = vld [vmem:[#allocation2 + $0x208] sm:$0xff]  ;;  %v121_v58 = vld [vmem:[%s3142_s1] sm:$0xff]  ;;  %v2182_v61 = vmul.f32 %v2173_v50, %v123_v53 }
  0x40   :  { %350 = vmatpush.msrb.mxu0 %v213_v14  ;;  %369 = vmatpush.msrb.mxu1 %v230_v15  ;;  %v220_v57 = vld [vmem:[#allocation2 + $0x290] sm:$0xff]  ;;  %v235_v59 = vld [vmem:[#allocation2 + $0x308] sm:$0xff]  ;;  %v124_v62 = vld [vmem:[%s3142_s1 + $0x18] sm:$0xff]  ;;  %v2188_v2 = vmul.f32 %v2173_v50, %v121_v58 }
  0x41   :  { %390 = vmatpush.msrb.mxu2 %v245_v16  ;;  %409 = vmatpush.msrb.mxu3 %v262_v17  ;;  %v252_v60 = vld [vmem:[#allocation2 + $0x390] sm:$0xff]  ;;  %v202_v63 = vld [vmem:[#allocation2 + $0x200] sm:$0xff]  ;;  %v219_v0 = vld [vmem:[#allocation2 + $0x288] sm:$0xff]  ;;  %v2194_v5 = vmul.f32 %v2173_v50, %v124_v62 }
  0x42   :  { %351 = vmatpush.msrb.mxu0 %v212_v18  ;;  %370 = vmatpush.msrb.mxu1 %v229_v19  ;;  %v234_v1 = vld [vmem:[#allocation2 + $0x300] sm:$0xff]  ;;  %v122_v3 = vld [vmem:[%s3142_s1 + $0x8] sm:$0xff]  ;;  %v441_v6 = vld [vmem:[#allocation5 + $0x78] sm:$0xff] }
  0x43   :  { %391 = vmatpush.msrb.mxu2 %v244_v20  ;;  %410 = vmatpush.msrb.mxu3 %v261_v21  ;;  %v251_v4 = vld [vmem:[#allocation2 + $0x388] sm:$0xff]  ;;  %v473_v7 = vld [vmem:[#allocation5 + $0x178] sm:$0xff]  ;;  %v218_v8 = vld [vmem:[#allocation2 + $0x280] sm:$0xff]  ;;  %v2198_v9 = vmul.f32 %v2173_v50, %v122_v3 }
  0x44   :  { %352 = vmatpush.msrb.mxu0 %v211_v22  ;;  %371 = vmatpush.msrb.mxu1 %v228_v23  ;;  %v250_v10 = vld [vmem:[#allocation2 + $0x380] sm:$0xff]  ;;  %v440_v11 = vld [vmem:[#allocation5 + $0x70] sm:$0xff]  ;;  %v457_v12 = vld [vmem:[#allocation5 + $0xf8] sm:$0xff] }
  0x45   :  { %392 = vmatpush.msrb.mxu2 %v243_v24  ;;  %411 = vmatpush.msrb.mxu3 %v260_v25  ;;  %v127_v13 = vld [vmem:[%s3142_s1 + $0x30] sm:$0xff]  ;;  %v489_v15 = vld [vmem:[#allocation5 + $0x1f8] sm:$0xff]  ;;  %v439_v16 = vld [vmem:[#allocation5 + $0x68] sm:$0xff] }
  0x46   :  { %353 = vmatpush.msrb.mxu0 %v210_v26  ;;  %372 = vmatpush.msrb.mxu1 %v227_v27  ;;  %v472_v14 = vld [vmem:[#allocation5 + $0x170] sm:$0xff]  ;;  %v125_v18 = vld [vmem:[%s3142_s1 + $0x20] sm:$0xff]  ;;  %v471_v19 = vld [vmem:[#allocation5 + $0x168] sm:$0xff]  ;;  %v2210_v21 = vmul.f32 %v2173_v50, %v127_v13 }
  0x47   :  { %393 = vmatpush.msrb.mxu2 %v242_v28  ;;  %412 = vmatpush.msrb.mxu3 %v259_v29  ;;  %v456_v17 = vld [vmem:[#allocation5 + $0xf0] sm:$0xff]  ;;  %v128_v22 = vld [vmem:[%s3142_s1 + $0x38] sm:$0xff]  ;;  %v438_v23 = vld [vmem:[#allocation5 + $0x60] sm:$0xff]  ;;  %v2216_v26 = vmul.f32 %v2173_v50, %v125_v18 }
  0x48   :  { %354 = vmatpush.msrb.mxu0 %v209_v30  ;;  %373 = vmatpush.msrb.mxu1 %v226_v31  ;;  %v488_v20 = vld [vmem:[#allocation5 + $0x1f0] sm:$0xff]  ;;  %v455_v24 = vld [vmem:[#allocation5 + $0xe8] sm:$0xff]  ;;  %v470_v25 = vld [vmem:[#allocation5 + $0x160] sm:$0xff]  ;;  %v2222_v29 = vmul.f32 %v2173_v50, %v128_v22 }
  0x49   :  { %394 = vmatpush.msrb.mxu2 %v241_v32  ;;  %413 = vmatpush.msrb.mxu3 %v258_v33  ;;  %v126_v27 = vld [vmem:[%s3142_s1 + $0x28] sm:$0xff]  ;;  %v437_v30 = vld [vmem:[#allocation5 + $0x58] sm:$0xff]  ;;  %v454_v31 = vld [vmem:[#allocation5 + $0xe0] sm:$0xff] }
  0x4a   :  { %355 = vmatpush.msrb.mxu0 %v208_v34  ;;  %374 = vmatpush.msrb.mxu1 %v225_v35  ;;  %v487_v28 = vld [vmem:[#allocation5 + $0x1e8] sm:$0xff]  ;;  %v469_v32 = vld [vmem:[#allocation5 + $0x158] sm:$0xff]  ;;  %v2226_v33 = vmul.f32 %v2173_v50, %v126_v27  ;;  %v486_v34 = vld [vmem:[#allocation5 + $0x1e0] sm:$0xff] }
  0x4b   :  { %395 = vmatpush.msrb.mxu2 %v240_v36  ;;  %414 = vmatpush.msrb.mxu3 %v257_v37  ;;  %v436_v35 = vld [vmem:[#allocation5 + $0x50] sm:$0xff]  ;;  %v453_v36 = vld [vmem:[#allocation5 + $0xd8] sm:$0xff]  ;;  %v482_v50 = vld [vmem:[#allocation5 + $0x1c0] sm:$0xff] }
  0x4c   :  { %356 = vmatpush.msrb.mxu0 %v207_v38  ;;  %375 = vmatpush.msrb.mxu1 %v224_v39  ;;  %v468_v37 = vld [vmem:[#allocation5 + $0x150] sm:$0xff]  ;;  %v485_v38 = vld [vmem:[#allocation5 + $0x1d8] sm:$0xff]  ;;  %v435_v39 = vld [vmem:[#allocation5 + $0x48] sm:$0xff] }
  0x4d   :  { %396 = vmatpush.msrb.mxu2 %v239_v40  ;;  %415 = vmatpush.msrb.mxu3 %v256_v41  ;;  %v452_v40 = vld [vmem:[#allocation5 + $0xd0] sm:$0xff]  ;;  %v467_v41 = vld [vmem:[#allocation5 + $0x148] sm:$0xff]  ;;  %v462_v62 = vld [vmem:[#allocation5 + $0x120] sm:$0xff] }
  0x4e   :  { %357 = vmatpush.msrb.mxu0 %v206_v42  ;;  %376 = vmatpush.msrb.mxu1 %v223_v43  ;;  %v484_v42 = vld [vmem:[#allocation5 + $0x1d0] sm:$0xff]  ;;  %v434_v43 = vld [vmem:[#allocation5 + $0x40] sm:$0xff]  ;;  %v461_v3 = vld [vmem:[#allocation5 + $0x118] sm:$0xff] }
  0x4f   :  { %397 = vmatpush.msrb.mxu2 %v238_v44  ;;  %416 = vmatpush.msrb.mxu3 %v255_v45  ;;  %v451_v44 = vld [vmem:[#allocation5 + $0xc8] sm:$0xff]  ;;  %v466_v45 = vld [vmem:[#allocation5 + $0x140] sm:$0xff]  ;;  %v464_v53 = vld [vmem:[#allocation5 + $0x130] sm:$0xff] }
  0x50   :  { %358 = vmatpush.msrb.mxu0 %v205_v46  ;;  %377 = vmatpush.msrb.mxu1 %v222_v47  ;;  %v483_v46 = vld [vmem:[#allocation5 + $0x1c8] sm:$0xff]  ;;  %v433_v47 = vld [vmem:[#allocation5 + $0x38] sm:$0xff]  ;;  %v480_v58 = vld [vmem:[#allocation5 + $0x1b0] sm:$0xff] }
  0x51   :  { %398 = vmatpush.msrb.mxu2 %v237_v48  ;;  %417 = vmatpush.msrb.mxu3 %v254_v49  ;;  %v450_v48 = vld [vmem:[#allocation5 + $0xc0] sm:$0xff]  ;;  %v465_v49 = vld [vmem:[#allocation5 + $0x138] sm:$0xff]  ;;  %v459_v13 = vld [vmem:[#allocation5 + $0x108] sm:$0xff] }
  0x52   :  { %359 = vmatpush.msrb.mxu0 %v204_v51  ;;  %378 = vmatpush.msrb.mxu1 %v221_v52  ;;  %v432_v51 = vld [vmem:[#allocation5 + $0x30] sm:$0xff]  ;;  %v449_v52 = vld [vmem:[#allocation5 + $0xb8] sm:$0xff]  ;;  %v475_v18 = vld [vmem:[#allocation5 + $0x188] sm:$0xff] }
  0x53   :  { %399 = vmatpush.msrb.mxu2 %v236_v54  ;;  %418 = vmatpush.msrb.mxu3 %v253_v55  ;;  %v481_v54 = vld [vmem:[#allocation5 + $0x1b8] sm:$0xff]  ;;  %v431_v55 = vld [vmem:[#allocation5 + $0x28] sm:$0xff]  ;;  %v442_v22 = vld [vmem:[#allocation5 + $0x80] sm:$0xff] }
  0x54   :  { %360 = vmatpush.msrb.mxu0 %v203_v56  ;;  %379 = vmatpush.msrb.mxu1 %v220_v57  ;;  %v448_v56 = vld [vmem:[#allocation5 + $0xb0] sm:$0xff]  ;;  %v463_v57 = vld [vmem:[#allocation5 + $0x128] sm:$0xff] }
  0x55   :  { %400 = vmatpush.msrb.mxu2 %v235_v59  ;;  %419 = vmatpush.msrb.mxu3 %v252_v60  ;;  %v430_v59 = vld [vmem:[#allocation5 + $0x20] sm:$0xff]  ;;  %v447_v60 = vld [vmem:[#allocation5 + $0xa8] sm:$0xff]  ;;  %v536_v27 = vld [vmem:[#allocation5 + $0x370] sm:$0xff] }
  0x56   :  { %322 = vmatmul.f32.vlgmr.msra.gmra.mxu2 %v2182_v61  ;;  %361 = vmatpush.msrb.mxu0 %v202_v63  ;;  %v479_v63 = vld [vmem:[#allocation5 + $0x1a8] sm:$0xff] }
  0x57   :  { %380 = vmatpush.msrb.mxu1 %v219_v0  ;;  %401 = vmatpush.msrb.mxu2 %v234_v1  ;;  %v429_v0 = vld [vmem:[#allocation5 + $0x18] sm:$0xff]  ;;  %v446_v1 = vld [vmem:[#allocation5 + $0xa0] sm:$0xff] }
  0x58   :  { %420 = vmatpush.msrb.mxu3 %v251_v4  ;;  %282 = vmatmul.f32.vlgmr.msra.gmra.mxu0 %v2188_v2  ;;  %v478_v4 = vld [vmem:[#allocation5 + $0x1a0] sm:$0xff] }
  0x59   :  { %342 = vmatmul.f32.vlgmr.msra.gmra.mxu3 %v2194_v5  ;;  %554 = vmatpush.msra.mxu0 %v441_v6  ;;  %v428_v6 = vld [vmem:[#allocation5 + $0x10] sm:$0xff] }
  0x5a   :  { %594 = vmatpush.msra.mxu2 %v473_v7  ;;  %381 = vmatpush.msrb.mxu1 %v218_v8  ;;  %v445_v7 = vld [vmem:[#allocation5 + $0x98] sm:$0xff]  ;;  %v460_v8 = vld [vmem:[#allocation5 + $0x110] sm:$0xff] }
  0x5b   :  { %421 = vmatpush.msrb.mxu3 %v250_v10  ;;  %302 = vmatmul.f32.vlgmr.msra.gmra.mxu1 %v2198_v9  ;;  %v477_v10 = vld [vmem:[#allocation5 + $0x198] sm:$0xff] }
  0x5c   :  { %555 = vmatpush.msra.mxu0 %v440_v11  ;;  %574 = vmatpush.msra.mxu1 %v457_v12  ;;  %v427_v11 = vld [vmem:[#allocation5 + $0x8] sm:$0xff]  ;;  %v444_v12 = vld [vmem:[#allocation5 + $0x90] sm:$0xff] }
  0x5d   :  { %595 = vmatpush.msra.mxu2 %v472_v14  ;;  %614 = vmatpush.msra.mxu3 %v489_v15  ;;  %v476_v14 = vld [vmem:[#allocation5 + $0x190] sm:$0xff]  ;;  %v426_v15 = vld [vmem:[#allocation5] sm:$0xff] }
  0x5e   :  { %556 = vmatpush.msra.mxu0 %v439_v16  ;;  %575 = vmatpush.msra.mxu1 %v456_v17  ;;  %v443_v16 = vld [vmem:[#allocation5 + $0x88] sm:$0xff]  ;;  %v458_v17 = vld [vmem:[#allocation5 + $0x100] sm:$0xff] }
  0x5f   :  { %596 = vmatpush.msra.mxu2 %v471_v19  ;;  %615 = vmatpush.msra.mxu3 %v488_v20  ;;  %v505_v19 = vld [vmem:[#allocation5 + $0x278] sm:$0xff] }
  0x60   :  { %402 = vmatmul.f32.vlgmr.msrb.gmra.mxu2 %v2210_v21  ;;  %557 = vmatpush.msra.mxu0 %v438_v23  ;;  %v537_v20 = vld [vmem:[#allocation5 + $0x378] sm:$0xff]  ;;  %v474_v23 = vld [vmem:[#allocation5 + $0x180] sm:$0xff] }
  0x61   :  { %576 = vmatpush.msra.mxu1 %v455_v24  ;;  %597 = vmatpush.msra.mxu2 %v470_v25  ;;  %v504_v24 = vld [vmem:[#allocation5 + $0x270] sm:$0xff]  ;;  %v521_v25 = vld [vmem:[#allocation5 + $0x2f8] sm:$0xff] }
  0x62   :  { %616 = vmatpush.msra.mxu3 %v487_v28  ;;  %362 = vmatmul.f32.vlgmr.msrb.gmra.mxu0 %v2216_v26  ;;  %v553_v28 = vld [vmem:[#allocation5 + $0x3f8] sm:$0xff] }
  0x63   :  { %422 = vmatmul.f32.vlgmr.msrb.gmra.mxu3 %v2222_v29  ;;  %558 = vmatpush.msra.mxu0 %v437_v30  ;;  %v503_v30 = vld [vmem:[#allocation5 + $0x268] sm:$0xff] }
  0x64   :  { %577 = vmatpush.msra.mxu1 %v454_v31  ;;  %598 = vmatpush.msra.mxu2 %v469_v32  ;;  %v520_v31 = vld [vmem:[#allocation5 + $0x2f0] sm:$0xff]  ;;  %v535_v32 = vld [vmem:[#allocation5 + $0x368] sm:$0xff] }
  0x65   :  { %617 = vmatpush.msra.mxu3 %v486_v34  ;;  %382 = vmatmul.f32.vlgmr.msrb.gmra.mxu1 %v2226_v33  ;;  %v552_v34 = vld [vmem:[#allocation5 + $0x3f0] sm:$0xff] }
  0x66   :  { %559 = vmatpush.msra.mxu0 %v436_v35  ;;  %578 = vmatpush.msra.mxu1 %v453_v36  ;;  %v502_v35 = vld [vmem:[#allocation5 + $0x260] sm:$0xff]  ;;  %v519_v36 = vld [vmem:[#allocation5 + $0x2e8] sm:$0xff] }
  0x67   :  { %599 = vmatpush.msra.mxu2 %v468_v37  ;;  %618 = vmatpush.msra.mxu3 %v485_v38  ;;  %v534_v37 = vld [vmem:[#allocation5 + $0x360] sm:$0xff]  ;;  %v551_v38 = vld [vmem:[#allocation5 + $0x3e8] sm:$0xff] }
  0x68   :  { %560 = vmatpush.msra.mxu0 %v435_v39  ;;  %579 = vmatpush.msra.mxu1 %v452_v40  ;;  %v501_v39 = vld [vmem:[#allocation5 + $0x258] sm:$0xff]  ;;  %v518_v40 = vld [vmem:[#allocation5 + $0x2e0] sm:$0xff] }
  0x69   :  { %600 = vmatpush.msra.mxu2 %v467_v41  ;;  %619 = vmatpush.msra.mxu3 %v484_v42  ;;  %v533_v41 = vld [vmem:[#allocation5 + $0x358] sm:$0xff]  ;;  %v550_v42 = vld [vmem:[#allocation5 + $0x3e0] sm:$0xff] }
  0x6a   :  { %561 = vmatpush.msra.mxu0 %v434_v43  ;;  %580 = vmatpush.msra.mxu1 %v451_v44  ;;  %v500_v43 = vld [vmem:[#allocation5 + $0x250] sm:$0xff]  ;;  %v517_v44 = vld [vmem:[#allocation5 + $0x2d8] sm:$0xff] }
  0x6b   :  { %601 = vmatpush.msra.mxu2 %v466_v45  ;;  %620 = vmatpush.msra.mxu3 %v483_v46  ;;  %v532_v45 = vld [vmem:[#allocation5 + $0x350] sm:$0xff]  ;;  %v549_v46 = vld [vmem:[#allocation5 + $0x3d8] sm:$0xff] }
  0x6c   :  { %562 = vmatpush.msra.mxu0 %v433_v47  ;;  %581 = vmatpush.msra.mxu1 %v450_v48  ;;  %v499_v47 = vld [vmem:[#allocation5 + $0x248] sm:$0xff]  ;;  %v516_v48 = vld [vmem:[#allocation5 + $0x2d0] sm:$0xff] }
  0x6d   :  { %602 = vmatpush.msra.mxu2 %v465_v49  ;;  %621 = vmatpush.msra.mxu3 %v482_v50  ;;  %v531_v49 = vld [vmem:[#allocation5 + $0x348] sm:$0xff]  ;;  %v548_v50 = vld [vmem:[#allocation5 + $0x3d0] sm:$0xff] }
  0x6e   :  { %563 = vmatpush.msra.mxu0 %v432_v51  ;;  %582 = vmatpush.msra.mxu1 %v449_v52  ;;  %v498_v51 = vld [vmem:[#allocation5 + $0x240] sm:$0xff]  ;;  %v515_v52 = vld [vmem:[#allocation5 + $0x2c8] sm:$0xff] }
  0x6f   :  { %603 = vmatpush.msra.mxu2 %v464_v53  ;;  %622 = vmatpush.msra.mxu3 %v481_v54  ;;  %v530_v53 = vld [vmem:[#allocation5 + $0x340] sm:$0xff]  ;;  %v547_v54 = vld [vmem:[#allocation5 + $0x3c8] sm:$0xff] }
  0x70   :  { %564 = vmatpush.msra.mxu0 %v431_v55  ;;  %583 = vmatpush.msra.mxu1 %v448_v56  ;;  %v497_v55 = vld [vmem:[#allocation5 + $0x238] sm:$0xff]  ;;  %v514_v56 = vld [vmem:[#allocation5 + $0x2c0] sm:$0xff] }
  0x71   :  { %604 = vmatpush.msra.mxu2 %v463_v57  ;;  %623 = vmatpush.msra.mxu3 %v480_v58  ;;  %v529_v57 = vld [vmem:[#allocation5 + $0x338] sm:$0xff]  ;;  %v546_v58 = vld [vmem:[#allocation5 + $0x3c0] sm:$0xff] }
  0x72   :  { %565 = vmatpush.msra.mxu0 %v430_v59  ;;  %584 = vmatpush.msra.mxu1 %v447_v60  ;;  %v496_v59 = vld [vmem:[#allocation5 + $0x230] sm:$0xff]  ;;  %v513_v60 = vld [vmem:[#allocation5 + $0x2b8] sm:$0xff] }
  0x73   :  { %605 = vmatpush.msra.mxu2 %v462_v62  ;;  %624 = vmatpush.msra.mxu3 %v479_v63  ;;  %v528_v62 = vld [vmem:[#allocation5 + $0x330] sm:$0xff]  ;;  %v545_v63 = vld [vmem:[#allocation5 + $0x3b8] sm:$0xff] }
  0x74   :  { %566 = vmatpush.msra.mxu0 %v429_v0  ;;  %585 = vmatpush.msra.mxu1 %v446_v1  ;;  %v495_v0 = vld [vmem:[#allocation5 + $0x228] sm:$0xff]  ;;  %v512_v1 = vld [vmem:[#allocation5 + $0x2b0] sm:$0xff] }
  0x75   :  { %606 = vmatpush.msra.mxu2 %v461_v3  ;;  %625 = vmatpush.msra.mxu3 %v478_v4  ;;  %v527_v3 = vld [vmem:[#allocation5 + $0x328] sm:$0xff]  ;;  %v544_v4 = vld [vmem:[#allocation5 + $0x3b0] sm:$0xff] }
  0x76   :  { %567 = vmatpush.msra.mxu0 %v428_v6  ;;  %586 = vmatpush.msra.mxu1 %v445_v7  ;;  %v494_v6 = vld [vmem:[#allocation5 + $0x220] sm:$0xff]  ;;  %v511_v7 = vld [vmem:[#allocation5 + $0x2a8] sm:$0xff] }
  0x77   :  { %607 = vmatpush.msra.mxu2 %v460_v8  ;;  %626 = vmatpush.msra.mxu3 %v477_v10  ;;  %v526_v8 = vld [vmem:[#allocation5 + $0x320] sm:$0xff]  ;;  %v543_v10 = vld [vmem:[#allocation5 + $0x3a8] sm:$0xff] }
  0x78   :  { %568 = vmatpush.msra.mxu0 %v427_v11  ;;  %587 = vmatpush.msra.mxu1 %v444_v12  ;;  %v493_v11 = vld [vmem:[#allocation5 + $0x218] sm:$0xff]  ;;  %v510_v12 = vld [vmem:[#allocation5 + $0x2a0] sm:$0xff] }
  0x79   :  { %608 = vmatpush.msra.mxu2 %v459_v13  ;;  %627 = vmatpush.msra.mxu3 %v476_v14  ;;  %v525_v13 = vld [vmem:[#allocation5 + $0x318] sm:$0xff]  ;;  %v542_v14 = vld [vmem:[#allocation5 + $0x3a0] sm:$0xff] }
  0x7a   :  { %569 = vmatpush.msra.mxu0 %v426_v15  ;;  %588 = vmatpush.msra.mxu1 %v443_v16  ;;  %v492_v15 = vld [vmem:[#allocation5 + $0x210] sm:$0xff]  ;;  %v509_v16 = vld [vmem:[#allocation5 + $0x298] sm:$0xff] }
  0x7b   :  { %609 = vmatpush.msra.mxu2 %v458_v17  ;;  %628 = vmatpush.msra.mxu3 %v475_v18  ;;  %v524_v17 = vld [vmem:[#allocation5 + $0x310] sm:$0xff]  ;;  %v541_v18 = vld [vmem:[#allocation5 + $0x398] sm:$0xff] }
  0x7c   :  { %634 = vmatpush.msrb.mxu0 %v505_v19  ;;  %589 = vmatpush.msra.mxu1 %v442_v22  ;;  %v508_v19 = vld [vmem:[#allocation5 + $0x290] sm:$0xff] }
  0x7d   :  { %674 = vmatpush.msrb.mxu2 %v537_v20  ;;  %629 = vmatpush.msra.mxu3 %v474_v23  ;;  %v523_v20 = vld [vmem:[#allocation5 + $0x308] sm:$0xff]  ;;  %v540_v22 = vld [vmem:[#allocation5 + $0x390] sm:$0xff]  ;;  %v522_v23 = vld [vmem:[#allocation5 + $0x300] sm:$0xff] }
  0x7e   :  { %635 = vmatpush.msrb.mxu0 %v504_v24  ;;  %654 = vmatpush.msrb.mxu1 %v521_v25  ;;  %v539_v24 = vld [vmem:[#allocation5 + $0x388] sm:$0xff]  ;;  %v506_v25 = vld [vmem:[#allocation5 + $0x280] sm:$0xff] }
  0x7f   :  { %675 = vmatpush.msrb.mxu2 %v536_v27  ;;  %694 = vmatpush.msrb.mxu3 %v553_v28  ;;  %v729_v27 = vld [vmem:[#allocation7 + $0x78] sm:$0xff]  ;;  %v728_v28 = vld [vmem:[#allocation7 + $0x70] sm:$0xff] }
  0x80   :  { %636 = vmatpush.msrb.mxu0 %v503_v30  ;;  %655 = vmatpush.msrb.mxu1 %v520_v31  ;;  %v727_v30 = vld [vmem:[#allocation7 + $0x68] sm:$0xff]  ;;  %v726_v31 = vld [vmem:[#allocation7 + $0x60] sm:$0xff] }
  0x81   :  { %676 = vmatpush.msrb.mxu2 %v535_v32  ;;  %695 = vmatpush.msrb.mxu3 %v552_v34  ;;  %v725_v32 = vld [vmem:[#allocation7 + $0x58] sm:$0xff] }
  0x82   :  { %637 = vmatpush.msrb.mxu0 %v502_v35  ;;  %656 = vmatpush.msrb.mxu1 %v519_v36 }
  0x83   :  { %677 = vmatpush.msrb.mxu2 %v534_v37  ;;  %696 = vmatpush.msrb.mxu3 %v551_v38 }
  0x84   :  { %638 = vmatpush.msrb.mxu0 %v501_v39  ;;  %657 = vmatpush.msrb.mxu1 %v518_v40 }
  0x85   :  { %678 = vmatpush.msrb.mxu2 %v533_v41  ;;  %697 = vmatpush.msrb.mxu3 %v550_v42 }
  0x86   :  { %639 = vmatpush.msrb.mxu0 %v500_v43  ;;  %658 = vmatpush.msrb.mxu1 %v517_v44 }
  0x87   :  { %679 = vmatpush.msrb.mxu2 %v532_v45  ;;  %698 = vmatpush.msrb.mxu3 %v549_v46  ;;  %v723_v46 = vld [vmem:[#allocation7 + $0x48] sm:$0xff] }
  0x88   :  { %640 = vmatpush.msrb.mxu0 %v499_v47  ;;  %659 = vmatpush.msrb.mxu1 %v516_v48  ;;  %v722_v47 = vld [vmem:[#allocation7 + $0x40] sm:$0xff]  ;;  %v721_v48 = vld [vmem:[#allocation7 + $0x38] sm:$0xff] }
  0x89   :  { %680 = vmatpush.msrb.mxu2 %v531_v49  ;;  %699 = vmatpush.msrb.mxu3 %v548_v50  ;;  %v720_v49 = vld [vmem:[#allocation7 + $0x30] sm:$0xff]  ;;  %v719_v50 = vld [vmem:[#allocation7 + $0x28] sm:$0xff] }
  0x8a   :  { %641 = vmatpush.msrb.mxu0 %v498_v51  ;;  %660 = vmatpush.msrb.mxu1 %v515_v52  ;;  %v718_v51 = vld [vmem:[#allocation7 + $0x20] sm:$0xff]  ;;  %v717_v52 = vld [vmem:[#allocation7 + $0x18] sm:$0xff] }
  0x8b   :  { %681 = vmatpush.msrb.mxu2 %v530_v53  ;;  %700 = vmatpush.msrb.mxu3 %v547_v54  ;;  %v716_v53 = vld [vmem:[#allocation7 + $0x10] sm:$0xff]  ;;  %v715_v54 = vld [vmem:[#allocation7 + $0x8] sm:$0xff] }
  0x8c   :  { %642 = vmatpush.msrb.mxu0 %v497_v55  ;;  %661 = vmatpush.msrb.mxu1 %v514_v56  ;;  %v714_v55 = vld [vmem:[#allocation7] sm:$0xff] }
  0x8d   :  { %682 = vmatpush.msrb.mxu2 %v529_v57  ;;  %701 = vmatpush.msrb.mxu3 %v546_v58 }
  0x8e   :  { %643 = vmatpush.msrb.mxu0 %v496_v59  ;;  %662 = vmatpush.msrb.mxu1 %v513_v60 }
  0x8f   :  { %683 = vmatpush.msrb.mxu2 %v528_v62  ;;  %702 = vmatpush.msrb.mxu3 %v545_v63 }
  0x90   :  { %644 = vmatpush.msrb.mxu0 %v495_v0  ;;  %663 = vmatpush.msrb.mxu1 %v512_v1 }
  0x91   :  { %684 = vmatpush.msrb.mxu2 %v527_v3  ;;  %703 = vmatpush.msrb.mxu3 %v544_v4 }
  0x92   :  { %610 = vmatmul.f32.vlgmr.msra.gmra.mxu2 %v2182_v61  ;;  %645 = vmatpush.msrb.mxu0 %v494_v6  ;;  %v491_v61 = vld [vmem:[#allocation5 + $0x208] sm:$0xff] }
  0x93   :  { %664 = vmatpush.msrb.mxu1 %v511_v7  ;;  %685 = vmatpush.msrb.mxu2 %v526_v8 }
  0x94   :  { %704 = vmatpush.msrb.mxu3 %v543_v10  ;;  %570 = vmatmul.f32.vlgmr.msra.gmra.mxu0 %v2188_v2  ;;  %v490_v2 = vld [vmem:[#allocation5 + $0x200] sm:$0xff] }
  0x95   :  { %630 = vmatmul.f32.vlgmr.msra.gmra.mxu3 %v2194_v5  ;;  %646 = vmatpush.msrb.mxu0 %v493_v11  ;;  %v507_v5 = vld [vmem:[#allocation5 + $0x288] sm:$0xff] }
  0x96   :  { %665 = vmatpush.msrb.mxu1 %v510_v12  ;;  %686 = vmatpush.msrb.mxu2 %v525_v13  ;;  %v775_v13 = vld [vmem:[#allocation8 + $0x18] sm:$0xff] }
  0x97   :  { %705 = vmatpush.msrb.mxu3 %v542_v14  ;;  %590 = vmatmul.f32.vlgmr.msra.gmra.mxu1 %v2198_v9  ;;  %v538_v9 = vld [vmem:[#allocation5 + $0x380] sm:$0xff]  ;;  %v774_v14 = vld [vmem:[#allocation8 + $0x10] sm:$0xff] }
  0x98   :  { %647 = vmatpush.msrb.mxu0 %v492_v15  ;;  %666 = vmatpush.msrb.mxu1 %v509_v16  ;;  %v773_v15 = vld [vmem:[#allocation8 + $0x8] sm:$0xff]  ;;  %v772_v16 = vld [vmem:[#allocation8] sm:$0xff] }
  0x99   :  { %687 = vmatpush.msrb.mxu2 %v524_v17  ;;  %706 = vmatpush.msrb.mxu3 %v541_v18 }
  0x9a   :  { %648 = vmatpush.msrb.mxu0 %v491_v61  ;;  %667 = vmatpush.msrb.mxu1 %v508_v19 }
  0x9b   :  { %688 = vmatpush.msrb.mxu2 %v523_v20  ;;  %707 = vmatpush.msrb.mxu3 %v540_v22 }
  0x9c   :  { %649 = vmatpush.msrb.mxu0 %v490_v2  ;;  %668 = vmatpush.msrb.mxu1 %v507_v5 }
  0x9d   :  { %689 = vmatpush.msrb.mxu2 %v522_v23  ;;  %708 = vmatpush.msrb.mxu3 %v539_v24 }
  0x9e   :  { %650 = vmatmul.f32.vlgmr.msrb.gmra.mxu0 %v2216_v26  ;;  %690 = vmatmul.f32.vlgmr.msrb.gmra.mxu2 %v2210_v21  ;;  %v724_v21 = vld [vmem:[#allocation7 + $0x50] sm:$0xff] }
  0x9f   :  { %669 = vmatpush.msrb.mxu1 %v506_v25  ;;  %709 = vmatpush.msrb.mxu3 %v538_v9 }
  0xa0   :  { %670 = vmatmul.f32.vlgmr.msrb.gmra.mxu1 %v2226_v33  ;;  %710 = vmatmul.f32.vlgmr.msrb.gmra.mxu3 %v2222_v29 }
  0xa1   :  { %730 = vmatpush.msra.mxu0 %v729_v27  ;;  %751 = vmatpush.msra.mxu1 %v729_v27 }
  0xa2   :  { %873 = vmatpush.msra.mxu2 %v775_v13 }
  0xa3   :  { %731 = vmatpush.msra.mxu0 %v728_v28  ;;  %752 = vmatpush.msra.mxu1 %v728_v28 }
  0xa4   :  { %874 = vmatpush.msra.mxu2 %v774_v14 }
  0xa5   :  { %732 = vmatpush.msra.mxu0 %v727_v30  ;;  %753 = vmatpush.msra.mxu1 %v727_v30  ;;  %v957_v30 = vld [vmem:[#allocation10 + $0x78] sm:$0xff] }
  0xa6   :  { %875 = vmatpush.msra.mxu2 %v773_v15  ;;  %1022 = vmatpush.msra.mxu3 %v957_v30 }
  0xa7   :  { %733 = vmatpush.msra.mxu0 %v726_v31  ;;  %754 = vmatpush.msra.mxu1 %v726_v31  ;;  %v958_v31 = vld [vmem:[#allocation10 + $0x80] sm:$0xff] }
  0xa8   :  { %876 = vmatpush.msra.mxu2 %v772_v16 }
  0xa9   :  { %734 = vmatpush.msra.mxu0 %v725_v32  ;;  %755 = vmatpush.msra.mxu1 %v725_v32  ;;  %v959_v32 = vld [vmem:[#allocation10 + $0x88] sm:$0xff] }
  0xab   :  { %735 = vmatpush.msra.mxu0 %v724_v21  ;;  %756 = vmatpush.msra.mxu1 %v724_v21  ;;  %v960_v21 = vld [vmem:[#allocation10 + $0x90] sm:$0xff] }
  0xac   :  { %1217 = vmatpush.msrb.mxu2 %v960_v21 }
  0xad   :  { %736 = vmatpush.msra.mxu0 %v723_v46  ;;  %757 = vmatpush.msra.mxu1 %v723_v46 }
  0xaf   :  { %737 = vmatpush.msra.mxu0 %v722_v47  ;;  %758 = vmatpush.msra.mxu1 %v722_v47 }
  0xb1   :  { %738 = vmatpush.msra.mxu0 %v721_v48  ;;  %759 = vmatpush.msra.mxu1 %v721_v48  ;;  %v2258_v48 = vld [vmem:[%s3147_s6] ss:$0 sm:$0xff] }
  0xb3   :  { %739 = vmatpush.msra.mxu0 %v720_v49  ;;  %760 = vmatpush.msra.mxu1 %v720_v49 }
  0xb5   :  { %740 = vmatpush.msra.mxu0 %v719_v50  ;;  %761 = vmatpush.msra.mxu1 %v719_v50 }
  0xb7   :  { %741 = vmatpush.msra.mxu0 %v718_v51  ;;  %762 = vmatpush.msra.mxu1 %v718_v51 }
  0xb9   :  { %742 = vmatpush.msra.mxu0 %v717_v52  ;;  %763 = vmatpush.msra.mxu1 %v717_v52  ;;  %v956_v52 = vld [vmem:[#allocation10 + $0x70] sm:$0xff] }
  0xbb   :  { %743 = vmatpush.msra.mxu0 %v716_v53  ;;  %764 = vmatpush.msra.mxu1 %v716_v53 }
  0xbd   :  { %744 = vmatpush.msra.mxu0 %v715_v54  ;;  %765 = vmatpush.msra.mxu1 %v715_v54 }
  0xbf   :  { %745 = vmatpush.msra.mxu0 %v714_v55  ;;  %766 = vmatpush.msra.mxu1 %v714_v55 }
  0xc1   :  { %1087 = vmatpush.msrb.mxu0 %v958_v31  ;;  %1152 = vmatpush.msrb.mxu1 %v959_v32 }
  0xd5   :  { %v283_v26 = vpop.f32.mrf.mxu0 }
  0xd8   :  { %v303_v29 = vpop.f32.mrf.mxu1 }
  0xd9   :  { %v304_v33 = vadd.f32 %v303_v29, %v283_v26  ;;  %v323_v34 = vpop.f32.mrf.mxu2  ;;  %v952_v26 = vld [vmem:[#allocation10 + $0x50] sm:$0xff] }
  0xda   :  { %1023 = vmatpush.msra.mxu3 %v952_v26 }
  0xdb   :  { %v324_v35 = vadd.f32 %v323_v34, %v304_v33  ;;  %v953_v33 = vld [vmem:[#allocation10 + $0x58] sm:$0xff]  ;;  %v954_v34 = vld [vmem:[#allocation10 + $0x60] sm:$0xff] }
  0xdc   :  { %v343_v36 = vpop.f32.mrf.mxu3  ;;  %1088 = vmatpush.msrb.mxu0 %v953_v33  ;;  %1153 = vmatpush.msrb.mxu1 %v954_v34 }
  0xdd   :  { %v344_v37 = vadd.f32 %v343_v36, %v324_v35  ;;  %v955_v35 = vld [vmem:[#allocation10 + $0x68] sm:$0xff] }
  0xde   :  { %1218 = vmatpush.msrb.mxu2 %v955_v35  ;;  %v947_v36 = vld [vmem:[#allocation10 + $0x28] sm:$0xff] }
  0xdf   :  { %v363_v38 = vpop.f32.mrf.mxu0  ;;  %1024 = vmatpush.msra.mxu3 %v947_v36 }
  0xe0   :  { %v364_v39 = vadd.f32 %v363_v38, %v344_v37  ;;  %v948_v37 = vld [vmem:[#allocation10 + $0x30] sm:$0xff]  ;;  %v949_v38 = vld [vmem:[#allocation10 + $0x38] sm:$0xff] }
  0xe1   :  { %1089 = vmatpush.msrb.mxu0 %v948_v37  ;;  %1154 = vmatpush.msrb.mxu1 %v949_v38 }
  0xe2   :  { %v383_v40 = vpop.f32.mrf.mxu1 }
  0xe3   :  { %v384_v41 = vadd.f32 %v383_v40, %v364_v39  ;;  %v403_v42 = vpop.f32.mrf.mxu2  ;;  %v950_v39 = vld [vmem:[#allocation10 + $0x40] sm:$0xff] }
  0xe4   :  { %1219 = vmatpush.msrb.mxu2 %v950_v39  ;;  %v942_v40 = vld [vmem:[#allocation10] sm:$0xff] }
  0xe5   :  { %v404_v43 = vadd.f32 %v403_v42, %v384_v41  ;;  %v943_v41 = vld [vmem:[#allocation10 + $0x8] sm:$0xff]  ;;  %v944_v42 = vld [vmem:[#allocation10 + $0x10] sm:$0xff]  ;;  %1025 = vmatpush.msra.mxu3 %v942_v40 }
  0xe6   :  { %v423_v44 = vpop.f32.mrf.mxu3  ;;  %1090 = vmatpush.msrb.mxu0 %v943_v41  ;;  %1155 = vmatpush.msrb.mxu1 %v944_v42 }
  0xe7   :  { %v424_v45 = vadd.f32 %v423_v44, %v404_v43  ;;  %v945_v44 = vld [vmem:[#allocation10 + $0x18] sm:$0xff] }
  0xe8   :  { %1220 = vmatpush.msrb.mxu2 %v945_v44 }
  0xe9   :  { %780 = vxpose.xlu0.b32.start [1/4] (short) %v424_v45, 128 }
 0x111   :  { %v571_v56 = vpop.f32.mrf.mxu0 }
 0x114   :  { %v591_v57 = vpop.f32.mrf.mxu1 }
 0x115   :  { %v592_v58 = vadd.f32 %v591_v57, %v571_v56  ;;  %v611_v59 = vpop.f32.mrf.mxu2 }
 0x117   :  { %v612_v60 = vadd.f32 %v611_v59, %v592_v58 }
 0x118   :  { %v631_v62 = vpop.f32.mrf.mxu3 }
 0x119   :  { %v632_v63 = vadd.f32 %v631_v62, %v612_v60 }
 0x11b   :  { %v651_v0 = vpop.f32.mrf.mxu0 }
 0x11c   :  { %v652_v1 = vadd.f32 %v651_v0, %v632_v63 }
 0x11d   :  { %v671_v3 = vpop.f32.mrf.mxu1 }
 0x11e   :  { %v672_v4 = vadd.f32 %v671_v3, %v652_v1  ;;  %v951_v3 = vld [vmem:[#allocation10 + $0x48] sm:$0xff] }
 0x121   :  { %v691_v6 = vpop.f32.mrf.mxu2 }
 0x122   :  { %v692_v7 = vadd.f32 %v691_v6, %v672_v4 }
 0x123   :  { %v711_v8 = vpop.f32.mrf.mxu3 }
 0x124   :  { %v712_v10 = vadd.f32 %v711_v8, %v692_v7 }
 0x126   :  { %746 = vmatmul.f32.vlgmr.msra.gmra.mxu0 %v712_v10  ;;  %781 = vxpose.xlu0.b32.cont [2/4] (short) %v712_v10, 128 }
 0x1a3   :  { %v747_v11 = vpop.f32.mrf.mxu0 }
 0x1a4   :  { %v750_v12 = vsub.f32 %v747_v11, %v424_v45  ;;  %v961_v45 = vld [vmem:[#allocation10 + $0x98] sm:$0xff] }
 0x1a5   :  { %1282 = vmatpush.msrb.mxu3 %v961_v45 }
 0x1a6   :  { %782 = vxpose.xlu0.b32.cont [3/4] (short) %v750_v12, 128  ;;  %767 = vmatmul.f32.vlgmr.msra.gmra.mxu1 %v750_v12 }
 0x1a7   :  { %1283 = vmatpush.msrb.mxu3 %v956_v52 }
 0x1a9   :  { %1284 = vmatpush.msrb.mxu3 %v951_v3 }
 0x223   :  { %v768_v17 = vpop.f32.mrf.mxu1 }
 0x224   :  { %v771_v18 = vsub.f32 %v768_v17, %v712_v10 }
 0x226   :  { %783 = vxpose.xlu0.b32.end [4/4] (short) %v771_v18, 128  ;;  %v946_v18 = vld [vmem:[#allocation10 + $0x20] sm:$0xff] }
 0x227   :  { %1285 = vmatpush.msrb.mxu3 %v946_v18 }
 0x2b2   :  { %v796_v61 = vpop.trf.xlu0 }
 0x2b3   :  { %1814 = vmatmul.msk.f32.vlgmr.msra.gmra.mxu2 %vm812_vm0, %v796_v61 }
 0x2ba   :  { %v797_v19 = vpop.trf.xlu0 }
 0x2bb   :  { %1815 = vmatmul.msk.f32.gmra.mxu2 %vm812_vm0, %v797_v19 }
 0x2c2   :  { %v798_v20 = vpop.trf.xlu0 }
 0x2c3   :  { %1816 = vmatmul.msk.f32.gmra.mxu2 %vm812_vm0, %v798_v20 }
 0x2ca   :  { %v799_v22 = vpop.trf.xlu0 }
 0x2cb   :  { %1817 = vmatmul.msk.f32.gmra.mxu2 %vm812_vm0, %v799_v22 }
 0x2d2   :  { %v800_v2 = vpop.trf.xlu0 }
 0x2d3   :  { %1818 = vmatmul.msk.f32.gmra.mxu2 %vm812_vm0, %v800_v2 }
 0x2da   :  { %v801_v5 = vpop.trf.xlu0 }
 0x2db   :  { %1819 = vmatmul.msk.f32.gmra.mxu2 %vm812_vm0, %v801_v5 }
 0x2e2   :  { %v802_v23 = vpop.trf.xlu0 }
 0x2e3   :  { %1820 = vmatmul.msk.f32.gmra.mxu2 %vm812_vm0, %v802_v23 }
 0x2ea   :  { %v803_v24 = vpop.trf.xlu0 }
 0x2eb   :  { %1821 = vmatmul.msk.f32.gmra.mxu2 %vm812_vm0, %v803_v24 }
 0x2f2   :  { %v804_v25 = vpop.trf.xlu0 }
 0x2f3   :  { %1822 = vmatmul.msk.f32.gmra.mxu2 %vm812_vm0, %v804_v25 }
 0x2fa   :  { %v805_v9 = vpop.trf.xlu0 }
 0x2fb   :  { %1823 = vmatmul.msk.f32.gmra.mxu2 %vm812_vm0, %v805_v9 }
 0x302   :  { %v806_v27 = vpop.trf.xlu0 }
 0x303   :  { %1824 = vmatmul.msk.f32.gmra.mxu2 %vm812_vm0, %v806_v27 }
 0x30a   :  { %v807_v28 = vpop.trf.xlu0 }
 0x30b   :  { %1825 = vmatmul.msk.f32.gmra.mxu2 %vm812_vm0, %v807_v28 }
 0x312   :  { %v808_v29 = vpop.trf.xlu0 }
 0x313   :  { %1826 = vmatmul.msk.f32.gmra.mxu2 %vm812_vm0, %v808_v29 }
 0x31a   :  { %v809_v43 = vpop.trf.xlu0 }
 0x31b   :  { %1827 = vmatmul.msk.f32.gmra.mxu2 %vm812_vm0, %v809_v43 }
 0x322   :  { %v810_v46 = vpop.trf.xlu0 }
 0x323   :  { %1828 = vmatmul.msk.f32.gmra.mxu2 %vm812_vm0, %v810_v46 }
 0x32a   :  { %v811_v47 = vpop.trf.xlu0 }
 0x32b   :  { %1829 = vmatmul.msk.f32.gmra.mxu2 %vm812_vm0, %v811_v47 }
 0x336   :  { %v878_v49 = vpop.f32.mrf.mxu2 }
 0x337   :  { %v879_v50 = vadd.f32 %v2258_v48, %v878_v49 }
 0x339   :  { %v2261_v51 = vmax.f32 %v879_v50, 0.0 }
 0x33b   :  { %1830 = vmatmul.msk.f32.vlgmr.msra.gmra.mxu3 %vm812_vm0, %v2261_v51  ;;  %1846 = vmatmul.msk.f32.vlgmr.msrb.gmra.mxu0 %vm812_vm0, %v2261_v51 }
 0x33c   :  { %1862 = vmatmul.msk.f32.vlgmr.msrb.gmra.mxu1 %vm812_vm0, %v2261_v51  ;;  %1878 = vmatmul.msk.f32.vlgmr.msrb.gmra.mxu2 %vm812_vm0, %v2261_v51 }
 0x33e   :  { %v881_v53 = vpop.f32.mrf.mxu2 }
 0x33f   :  { %v882_v54 = vadd.f32 %v2258_v48, %v881_v53 }
 0x341   :  { %v2272_v55 = vmax.f32 %v882_v54, 0.0 }
 0x343   :  { %1831 = vmatmul.msk.f32.gmra.mxu3 %vm812_vm0, %v2272_v55  ;;  %1847 = vmatmul.msk.f32.gmra.mxu0 %vm812_vm0, %v2272_v55 }
 0x344   :  { %1863 = vmatmul.msk.f32.gmra.mxu1 %vm812_vm0, %v2272_v55  ;;  %1879 = vmatmul.msk.f32.gmra.mxu2 %vm812_vm0, %v2272_v55 }
 0x346   :  { %v884_v56 = vpop.f32.mrf.mxu2 }
 0x347   :  { %v885_v57 = vadd.f32 %v2258_v48, %v884_v56 }
 0x349   :  { %v2283_v58 = vmax.f32 %v885_v57, 0.0 }
 0x34b   :  { %1832 = vmatmul.msk.f32.gmra.mxu3 %vm812_vm0, %v2283_v58  ;;  %1848 = vmatmul.msk.f32.gmra.mxu0 %vm812_vm0, %v2283_v58 }
 0x34c   :  { %1864 = vmatmul.msk.f32.gmra.mxu1 %vm812_vm0, %v2283_v58  ;;  %1880 = vmatmul.msk.f32.gmra.mxu2 %vm812_vm0, %v2283_v58 }
 0x34e   :  { %v887_v59 = vpop.f32.mrf.mxu2 }
 0x34f   :  { %v888_v60 = vadd.f32 %v2258_v48, %v887_v59 }
 0x351   :  { %v2294_v62 = vmax.f32 %v888_v60, 0.0 }
 0x353   :  { %1833 = vmatmul.msk.f32.gmra.mxu3 %vm812_vm0, %v2294_v62  ;;  %1849 = vmatmul.msk.f32.gmra.mxu0 %vm812_vm0, %v2294_v62 }
 0x354   :  { %1865 = vmatmul.msk.f32.gmra.mxu1 %vm812_vm0, %v2294_v62  ;;  %1881 = vmatmul.msk.f32.gmra.mxu2 %vm812_vm0, %v2294_v62 }
 0x356   :  { %v890_v63 = vpop.f32.mrf.mxu2 }
 0x357   :  { %v891_v0 = vadd.f32 %v2258_v48, %v890_v63 }
 0x359   :  { %v2305_v1 = vmax.f32 %v891_v0, 0.0 }
 0x35b   :  { %1834 = vmatmul.msk.f32.gmra.mxu3 %vm812_vm0, %v2305_v1  ;;  %1850 = vmatmul.msk.f32.gmra.mxu0 %vm812_vm0, %v2305_v1 }
 0x35c   :  { %1866 = vmatmul.msk.f32.gmra.mxu1 %vm812_vm0, %v2305_v1  ;;  %1882 = vmatmul.msk.f32.gmra.mxu2 %vm812_vm0, %v2305_v1 }
 0x35e   :  { %v893_v4 = vpop.f32.mrf.mxu2 }
 0x35f   :  { %v894_v6 = vadd.f32 %v2258_v48, %v893_v4 }
 0x361   :  { %v2316_v7 = vmax.f32 %v894_v6, 0.0 }
 0x363   :  { %1835 = vmatmul.msk.f32.gmra.mxu3 %vm812_vm0, %v2316_v7  ;;  %1851 = vmatmul.msk.f32.gmra.mxu0 %vm812_vm0, %v2316_v7 }
 0x364   :  { %1867 = vmatmul.msk.f32.gmra.mxu1 %vm812_vm0, %v2316_v7  ;;  %1883 = vmatmul.msk.f32.gmra.mxu2 %vm812_vm0, %v2316_v7 }
 0x366   :  { %v896_v8 = vpop.f32.mrf.mxu2 }
 0x367   :  { %v897_v10 = vadd.f32 %v2258_v48, %v896_v8 }
 0x369   :  { %v2327_v11 = vmax.f32 %v897_v10, 0.0 }
 0x36b   :  { %1836 = vmatmul.msk.f32.gmra.mxu3 %vm812_vm0, %v2327_v11  ;;  %1852 = vmatmul.msk.f32.gmra.mxu0 %vm812_vm0, %v2327_v11 }
 0x36c   :  { %1868 = vmatmul.msk.f32.gmra.mxu1 %vm812_vm0, %v2327_v11  ;;  %1884 = vmatmul.msk.f32.gmra.mxu2 %vm812_vm0, %v2327_v11 }
 0x36e   :  { %v899_v12 = vpop.f32.mrf.mxu2 }
 0x36f   :  { %v900_v13 = vadd.f32 %v2258_v48, %v899_v12 }
 0x371   :  { %v2338_v14 = vmax.f32 %v900_v13, 0.0 }
 0x373   :  { %1837 = vmatmul.msk.f32.gmra.mxu3 %vm812_vm0, %v2338_v14  ;;  %1853 = vmatmul.msk.f32.gmra.mxu0 %vm812_vm0, %v2338_v14 }
 0x374   :  { %1869 = vmatmul.msk.f32.gmra.mxu1 %vm812_vm0, %v2338_v14  ;;  %1885 = vmatmul.msk.f32.gmra.mxu2 %vm812_vm0, %v2338_v14 }
 0x376   :  { %v902_v15 = vpop.f32.mrf.mxu2 }
 0x377   :  { %v903_v16 = vadd.f32 %v2258_v48, %v902_v15 }
 0x379   :  { %v2349_v17 = vmax.f32 %v903_v16, 0.0 }
 0x37b   :  { %1838 = vmatmul.msk.f32.gmra.mxu3 %vm812_vm0, %v2349_v17  ;;  %1854 = vmatmul.msk.f32.gmra.mxu0 %vm812_vm0, %v2349_v17 }
 0x37c   :  { %1870 = vmatmul.msk.f32.gmra.mxu1 %vm812_vm0, %v2349_v17  ;;  %1886 = vmatmul.msk.f32.gmra.mxu2 %vm812_vm0, %v2349_v17 }
 0x37e   :  { %v905_v61 = vpop.f32.mrf.mxu2 }
 0x37f   :  { %v906_v19 = vadd.f32 %v2258_v48, %v905_v61 }
 0x381   :  { %v2360_v20 = vmax.f32 %v906_v19, 0.0 }
 0x383   :  { %1839 = vmatmul.msk.f32.gmra.mxu3 %vm812_vm0, %v2360_v20  ;;  %1855 = vmatmul.msk.f32.gmra.mxu0 %vm812_vm0, %v2360_v20 }
 0x384   :  { %1871 = vmatmul.msk.f32.gmra.mxu1 %vm812_vm0, %v2360_v20  ;;  %1887 = vmatmul.msk.f32.gmra.mxu2 %vm812_vm0, %v2360_v20 }
 0x386   :  { %v908_v22 = vpop.f32.mrf.mxu2 }
 0x387   :  { %v909_v2 = vadd.f32 %v2258_v48, %v908_v22 }
 0x389   :  { %v2371_v5 = vmax.f32 %v909_v2, 0.0 }
 0x38b   :  { %1840 = vmatmul.msk.f32.gmra.mxu3 %vm812_vm0, %v2371_v5  ;;  %1856 = vmatmul.msk.f32.gmra.mxu0 %vm812_vm0, %v2371_v5 }
 0x38c   :  { %1872 = vmatmul.msk.f32.gmra.mxu1 %vm812_vm0, %v2371_v5  ;;  %1888 = vmatmul.msk.f32.gmra.mxu2 %vm812_vm0, %v2371_v5 }
 0x38e   :  { %v911_v23 = vpop.f32.mrf.mxu2 }
 0x38f   :  { %v912_v24 = vadd.f32 %v2258_v48, %v911_v23 }
 0x391   :  { %v2382_v25 = vmax.f32 %v912_v24, 0.0 }
 0x393   :  { %1841 = vmatmul.msk.f32.gmra.mxu3 %vm812_vm0, %v2382_v25  ;;  %1857 = vmatmul.msk.f32.gmra.mxu0 %vm812_vm0, %v2382_v25 }
 0x394   :  { %1873 = vmatmul.msk.f32.gmra.mxu1 %vm812_vm0, %v2382_v25  ;;  %1889 = vmatmul.msk.f32.gmra.mxu2 %vm812_vm0, %v2382_v25 }
 0x396   :  { %v914_v9 = vpop.f32.mrf.mxu2 }
 0x397   :  { %v915_v27 = vadd.f32 %v2258_v48, %v914_v9 }
 0x399   :  { %v2393_v28 = vmax.f32 %v915_v27, 0.0 }
 0x39b   :  { %1842 = vmatmul.msk.f32.gmra.mxu3 %vm812_vm0, %v2393_v28  ;;  %1858 = vmatmul.msk.f32.gmra.mxu0 %vm812_vm0, %v2393_v28 }
 0x39c   :  { %1874 = vmatmul.msk.f32.gmra.mxu1 %vm812_vm0, %v2393_v28  ;;  %1890 = vmatmul.msk.f32.gmra.mxu2 %vm812_vm0, %v2393_v28 }
 0x39e   :  { %v917_v30 = vpop.f32.mrf.mxu2 }
 0x39f   :  { %v918_v31 = vadd.f32 %v2258_v48, %v917_v30 }
 0x3a1   :  { %v2404_v32 = vmax.f32 %v918_v31, 0.0  ;;  %v1407_v31 = vld [vmem:[%s3149_s8 + $0x238] sm:$0xff] }
 0x3a3   :  { %1843 = vmatmul.msk.f32.gmra.mxu3 %vm812_vm0, %v2404_v32  ;;  %1859 = vmatmul.msk.f32.gmra.mxu0 %vm812_vm0, %v2404_v32 }
 0x3a4   :  { %1875 = vmatmul.msk.f32.gmra.mxu1 %vm812_vm0, %v2404_v32  ;;  %1891 = vmatmul.msk.f32.gmra.mxu2 %vm812_vm0, %v2404_v32 }
 0x3a6   :  { %v920_v21 = vpop.f32.mrf.mxu2 }
 0x3a7   :  { %v921_v26 = vadd.f32 %v2258_v48, %v920_v21 }
 0x3a9   :  { %v2415_v29 = vmax.f32 %v921_v26, 0.0  ;;  %v1402_v26 = vld [vmem:[%s3149_s8 + $0x210] sm:$0xff] }
 0x3ab   :  { %1844 = vmatmul.msk.f32.gmra.mxu3 %vm812_vm0, %v2415_v29  ;;  %1860 = vmatmul.msk.f32.gmra.mxu0 %vm812_vm0, %v2415_v29 }
 0x3ac   :  { %1876 = vmatmul.msk.f32.gmra.mxu1 %vm812_vm0, %v2415_v29  ;;  %1892 = vmatmul.msk.f32.gmra.mxu2 %vm812_vm0, %v2415_v29 }
 0x3ae   :  { %v923_v33 = vpop.f32.mrf.mxu2 }
 0x3af   :  { %v924_v34 = vadd.f32 %v2258_v48, %v923_v33 }
 0x3b1   :  { %v2426_v35 = vmax.f32 %v924_v34, 0.0  ;;  %v1411_v34 = vld [vmem:[%s3149_s8 + $0x258] sm:$0xff] }
 0x3b3   :  { %1845 = vmatmul.msk.f32.gmra.mxu3 %vm812_vm0, %v2426_v35  ;;  %1861 = vmatmul.msk.f32.gmra.mxu0 %vm812_vm0, %v2426_v35 }
 0x3b4   :  { %1877 = vmatmul.msk.f32.gmra.mxu1 %vm812_vm0, %v2426_v35  ;;  %1893 = vmatmul.msk.f32.gmra.mxu2 %vm812_vm0, %v2426_v35 }
 0x3b8   :  { %v2436_v36 = vpop.f32.mrf.mxu0 }
 0x3b9   :  { %v2440_v37 = vpop.f32.mrf.mxu1 }
 0x3ba   :  { %3154 = vst [vmem:[#allocation16_spill] sm:$0xff] %v2440_v37 }
 0x3bb   :  { %1894 = vmatmul.msk.f32.vlgmr.msrb.gmra.mxu3 %vm812_vm0, %v2261_v51 }
 0x3be   :  { %v2442_v38 = vpop.f32.mrf.mxu3 }
 0x3bf   :  { %v2444_v39 = vpop.f32.mrf.mxu2 }
 0x3c0   :  { %v2446_v40 = vpop.f32.mrf.mxu0 }
 0x3c1   :  { %v2452_v42 = vpop.f32.mrf.mxu1 }
 0x3c2   :  { %3155 = vst [vmem:[#allocation17_spill] sm:$0xff] %v2452_v42  ;;  %v1387_v42 = vld [vmem:[%s3149_s8 + $0x198] sm:$0xff] }
 0x3c3   :  { %1895 = vmatmul.msk.f32.gmra.mxu3 %vm812_vm0, %v2272_v55 }
 0x3c6   :  { %v2450_v41 = vpop.f32.mrf.mxu3 }
 0x3c7   :  { %v2454_v43 = vpop.f32.mrf.mxu2 }
 0x3c8   :  { %v2456_v44 = vpop.f32.mrf.mxu0 }
 0x3c9   :  { %v2466_v48 = vpop.f32.mrf.mxu1 }
 0x3ca   :  { %3156 = vst [vmem:[#allocation18_spill] sm:$0xff] %v2466_v48 }
 0x3cb   :  { %1896 = vmatmul.msk.f32.gmra.mxu3 %vm812_vm0, %v2283_v58 }
 0x3ce   :  { %v2460_v45 = vpop.f32.mrf.mxu3 }
 0x3cf   :  { %v2462_v46 = vpop.f32.mrf.mxu2 }
 0x3d0   :  { %v2464_v47 = vpop.f32.mrf.mxu0 }
 0x3d1   :  { %v2476_v52 = vpop.f32.mrf.mxu1 }
 0x3d3   :  { %1897 = vmatmul.msk.f32.gmra.mxu3 %vm812_vm0, %v2294_v62 }
 0x3d6   :  { %v2470_v49 = vpop.f32.mrf.mxu3 }
 0x3d7   :  { %v2472_v50 = vpop.f32.mrf.mxu2 }
 0x3d8   :  { %v2474_v51 = vpop.f32.mrf.mxu0 }
 0x3d9   :  { %v2488_v56 = vpop.f32.mrf.mxu1 }
 0x3db   :  { %1898 = vmatmul.msk.f32.gmra.mxu3 %vm812_vm0, %v2305_v1 }
 0x3de   :  { %v2480_v53 = vpop.f32.mrf.mxu3 }
 0x3df   :  { %v2482_v54 = vpop.f32.mrf.mxu2 }
 0x3e0   :  { %v2484_v55 = vpop.f32.mrf.mxu0 }
 0x3e1   :  { %v2500_v62 = vpop.f32.mrf.mxu1 }
 0x3e3   :  { %1899 = vmatmul.msk.f32.gmra.mxu3 %vm812_vm0, %v2316_v7 }
 0x3e6   :  { %v2490_v57 = vpop.f32.mrf.mxu3 }
 0x3e7   :  { %v2494_v59 = vpop.f32.mrf.mxu2 }
 0x3e8   :  { %v2492_v58 = vpop.f32.mrf.mxu0 }
 0x3e9   :  { %v2512_v4 = vpop.f32.mrf.mxu1 }
 0x3eb   :  { %1900 = vmatmul.msk.f32.gmra.mxu3 %vm812_vm0, %v2327_v11 }
 0x3ee   :  { %v2498_v60 = vpop.f32.mrf.mxu3 }
 0x3ef   :  { %v2504_v0 = vpop.f32.mrf.mxu2 }
 0x3f0   :  { %v2502_v63 = vpop.f32.mrf.mxu0 }
 0x3f1   :  { %v2520_v10 = vpop.f32.mrf.mxu1 }
 0x3f3   :  { %1901 = vmatmul.msk.f32.gmra.mxu3 %vm812_vm0, %v2338_v14 }
 0x3f6   :  { %v2508_v1 = vpop.f32.mrf.mxu3 }
 0x3f7   :  { %v2516_v6 = vpop.f32.mrf.mxu2 }
 0x3f8   :  { %v2510_v3 = vpop.f32.mrf.mxu0 }
 0x3f9   :  { %v2530_v14 = vpop.f32.mrf.mxu1 }
 0x3fb   :  { %1902 = vmatmul.msk.f32.gmra.mxu3 %vm812_vm0, %v2349_v17 }
 0x3fe   :  { %v2518_v7 = vpop.f32.mrf.mxu3 }
 0x3ff   :  { %v2526_v12 = vpop.f32.mrf.mxu2 }
 0x400   :  { %v1119_v8 = vpop.f32.mrf.mxu0 }
 0x401   :  { %v2538_v61 = vpop.f32.mrf.mxu1 }
 0x403   :  { %1903 = vmatmul.msk.f32.gmra.mxu3 %vm812_vm0, %v2360_v20 }
 0x406   :  { %v2524_v11 = vpop.f32.mrf.mxu3 }
 0x407   :  { %v2534_v17 = vpop.f32.mrf.mxu2 }
 0x408   :  { %v1122_v13 = vpop.f32.mrf.mxu0 }
 0x40b   :  { %1904 = vmatmul.msk.f32.gmra.mxu3 %vm812_vm0, %v2371_v5  ;;  %v2544_v5 = vpop.f32.mrf.mxu1 }
 0x40e   :  { %v2532_v15 = vpop.f32.mrf.mxu3 }
 0x40f   :  { %v2540_v20 = vpop.f32.mrf.mxu2 }
 0x410   :  { %v1125_v16 = vpop.f32.mrf.mxu0 }
 0x413   :  { %1905 = vmatmul.msk.f32.gmra.mxu3 %vm812_vm0, %v2382_v25  ;;  %v2550_v9 = vpop.f32.mrf.mxu1 }
 0x416   :  { %v1060_v18 = vpop.f32.mrf.mxu3 }
 0x417   :  { %v2548_v23 = vpop.f32.mrf.mxu2 }
 0x418   :  { %v1128_v19 = vpop.f32.mrf.mxu0 }
 0x41b   :  { %1906 = vmatmul.msk.f32.gmra.mxu3 %vm812_vm0, %v2393_v28  ;;  %v1412_v28 = vld [vmem:[%s3149_s8 + $0x260] sm:$0xff]  ;;  %v2573_v37 = vpop.f32.mrf.mxu1 }
 0x41e   :  { %v1063_v22 = vpop.f32.mrf.mxu3 }
 0x41f   :  { %v2557_v30 = vpop.f32.mrf.mxu2 }
 0x420   :  { %v1131_v2 = vpop.f32.mrf.mxu0 }
 0x423   :  { %1907 = vmatmul.msk.f32.gmra.mxu3 %vm812_vm0, %v2404_v32 }
 0x426   :  { %v1066_v24 = vpop.f32.mrf.mxu3 }
 0x428   :  { %v1134_v25 = vpop.f32.mrf.mxu0 }
 0x429   :  { %v1487_v33 = vmul.f32 %v1407_v31, %v1134_v25  ;;  %v1392_v25 = vld [vmem:[%s3149_s8 + $0x1c0] sm:$0xff] }
 0x42b   :  { %1908 = vmatmul.msk.f32.gmra.mxu3 %vm812_vm0, %v2415_v29  ;;  %v1397_v29 = vld [vmem:[%s3149_s8 + $0x1e8] sm:$0xff] }
 0x42e   :  { %v1069_v27 = vpop.f32.mrf.mxu3 }
 0x430   :  { %v1137_v32 = vpop.f32.mrf.mxu0 }
 0x431   :  { %v1492_v21 = vmul.f32 %v1412_v28, %v1137_v32  ;;  %v1482_v28 = vmul.f32 %v1402_v26, %v1131_v2  ;;  %v1477_v32 = vmul.f32 %v1397_v29, %v1128_v19  ;;  %v1401_v2 = vld [vmem:[%s3149_s8 + $0x208] sm:$0xff]  ;;  %v1472_v26 = vmul.f32 %v1392_v25, %v1125_v16  ;;  %v1382_v19 = vld [vmem:[%s3149_s8 + $0x170] sm:$0xff]  ;;  %v1396_v29 = vld [vmem:[%s3149_s8 + $0x1e0] sm:$0xff] }
 0x432   :  { %v1377_v16 = vld [vmem:[%s3149_s8 + $0x148] sm:$0xff]  ;;  %v1462_v25 = vmul.f32 %v1382_v19, %v1119_v8  ;;  %v1367_v8 = vld [vmem:[%s3149_s8 + $0xf8] sm:$0xff] }
 0x433   :  { %1909 = vmatmul.msk.f32.gmra.mxu3 %vm812_vm0, %v2426_v35  ;;  %1516 = vmatpush.msra.mxu1 %v1492_v21  ;;  %v1406_v35 = vld [vmem:[%s3149_s8 + $0x230] sm:$0xff] }
 0x434   :  { %v1486_v48 = vmul.f32 %v1406_v35, %v1069_v27  ;;  %v1391_v27 = vld [vmem:[%s3149_s8 + $0x1b8] sm:$0xff]  ;;  %v1476_v35 = vmul.f32 %v1396_v29, %v1063_v22  ;;  %v1381_v22 = vld [vmem:[%s3149_s8 + $0x168] sm:$0xff] }
 0x435   :  { %1517 = vmatpush.msra.mxu1 %v1487_v33  ;;  %v2587_v33 = vpop.f32.mrf.mxu2  ;;  %v1461_v19 = vmul.f32 %v1381_v22, %v2524_v11  ;;  %v1366_v11 = vld [vmem:[%s3149_s8 + $0xf0] sm:$0xff] }
 0x436   :  { %v1072_v31 = vpop.f32.mrf.mxu3 }
 0x437   :  { %v1491_v21 = vmul.f32 %v1411_v34, %v1072_v31  ;;  %1518 = vmatpush.msra.mxu1 %v1482_v28  ;;  %v1467_v34 = vmul.f32 %v1387_v42, %v1122_v13  ;;  %v1481_v28 = vmul.f32 %v1401_v2, %v1066_v24  ;;  %v1372_v31 = vld [vmem:[%s3149_s8 + $0x120] sm:$0xff]  ;;  %v1386_v42 = vld [vmem:[%s3149_s8 + $0x190] sm:$0xff]  ;;  %v1457_v13 = vmul.f32 %v1377_v16, %v2510_v3 }
 0x438   :  { %v1471_v24 = vmul.f32 %v1391_v27, %v1060_v18  ;;  %v1466_v2 = vmul.f32 %v1386_v42, %v2532_v15  ;;  %v1362_v3 = vld [vmem:[%s3149_s8 + $0xd0] sm:$0xff]  ;;  %v1376_v18 = vld [vmem:[%s3149_s8 + $0x140] sm:$0xff]  ;;  %v1371_v15 = vld [vmem:[%s3149_s8 + $0x118] sm:$0xff] }
 0x439   :  { %1496 = vmatpush.msra.mxu0 %v1491_v21  ;;  %1519 = vmatpush.msra.mxu1 %v1477_v32  ;;  %v2610_v32 = vpop.f32.mrf.mxu1  ;;  %v1452_v21 = vmul.f32 %v1372_v31, %v2502_v63  ;;  %v1357_v63 = vld [vmem:[%s3149_s8 + $0xa8] sm:$0xff]  ;;  %v1446_v31 = vmul.f32 %v1366_v11, %v2498_v60  ;;  %v1351_v60 = vld [vmem:[%s3149_s8 + $0x78] sm:$0xff] }
 0x43a   :  { %v1437_v27 = vmul.f32 %v1357_v63, %v2474_v51  ;;  %v1342_v51 = vld [vmem:[%s3149_s8 + $0x30] sm:$0xff]  ;;  %v1404_v63 = vld [vmem:[%s3149_s8 + $0x220] sm:$0xff] }
 0x43b   :  { %1497 = vmatpush.msra.mxu0 %v1486_v48  ;;  %1520 = vmatpush.msra.mxu1 %v1472_v26  ;;  %v1447_v26 = vmul.f32 %v1367_v8, %v2492_v58  ;;  %v1352_v58 = vld [vmem:[%s3149_s8 + $0x80] sm:$0xff]  ;;  %v1422_v8 = vmul.f32 %v1342_v51, %v2446_v40  ;;  %v1409_v40 = vld [vmem:[%s3149_s8 + $0x248] sm:$0xff] }
 0x43d   :  { %1498 = vmatpush.msra.mxu0 %v1481_v28  ;;  %1521 = vmatpush.msra.mxu1 %v1467_v34  ;;  %v1264_v29 = vpop.f32.mrf.mxu2  ;;  %v1442_v34 = vmul.f32 %v1362_v3, %v2484_v55  ;;  %v1456_v28 = vmul.f32 %v1376_v18, %v2518_v7  ;;  %v1347_v55 = vld [vmem:[%s3149_s8 + $0x58] sm:$0xff]  ;;  %v1361_v7 = vld [vmem:[%s3149_s8 + $0xc8] sm:$0xff]  ;;  %v1431_v18 = vmul.f32 %v1351_v60, %v2470_v49 }
 0x43e   :  { %v2607_v48 = vpop.f32.mrf.mxu3  ;;  %v1489_v49 = vmul.f32 %v1409_v40, %v1264_v29  ;;  %v1394_v29 = vld [vmem:[%s3149_s8 + $0x1d0] sm:$0xff] }
 0x43f   :  { %1499 = vmatpush.msra.mxu0 %v1476_v35  ;;  %1522 = vmatpush.msra.mxu1 %v1462_v25  ;;  %v1451_v25 = vmul.f32 %v1371_v15, %v2508_v1  ;;  %v1432_v35 = vmul.f32 %v1352_v58, %v2464_v47  ;;  %v1356_v1 = vld [vmem:[%s3149_s8 + $0xa0] sm:$0xff]  ;;  %v1337_v47 = vld [vmem:[%s3149_s8 + $0x8] sm:$0xff]  ;;  %v1484_v58 = vmul.f32 %v1404_v63, %v2587_v33 }
 0x440   :  { %v1436_v22 = vmul.f32 %v1356_v1, %v2480_v53  ;;  %v1417_v3 = vmul.f32 %v1337_v47, %v2436_v36  ;;  %v1341_v53 = vld [vmem:[%s3149_s8 + $0x28] sm:$0xff]  ;;  %v1336_v36 = vld [vmem:[%s3149_s8] sm:$0xff] }
 0x441   :  { %1500 = vmatpush.msra.mxu0 %v1471_v24  ;;  %1523 = vmatpush.msra.mxu1 %v1457_v13  ;;  %v1199_v42 = vpop.f32.mrf.mxu1  ;;  %v1427_v13 = vmul.f32 %v1347_v55, %v2456_v44  ;;  %v1441_v24 = vmul.f32 %v1361_v7, %v2490_v57  ;;  %v1414_v44 = vld [vmem:[%s3149_s8 + $0x270] sm:$0xff]  ;;  %v1421_v15 = vmul.f32 %v1341_v53, %v2450_v41  ;;  %v1408_v41 = vld [vmem:[%s3149_s8 + $0x240] sm:$0xff]  ;;  %v1389_v33 = vld [vmem:[%s3149_s8 + $0x1a8] sm:$0xff] }
 0x442   :  { %v1346_v57 = vld [vmem:[%s3149_s8 + $0x50] sm:$0xff]  ;;  %v1416_v11 = vmul.f32 %v1336_v36, %v2442_v38  ;;  %v1403_v38 = vld [vmem:[%s3149_s8 + $0x218] sm:$0xff]  ;;  %v1474_v7 = vmul.f32 %v1394_v29, %v2548_v23  ;;  %v1469_v51 = vmul.f32 %v1389_v33, %v2540_v20 }
 0x443   :  { %1501 = vmatpush.msra.mxu0 %v1466_v2  ;;  %1524 = vmatpush.msra.mxu1 %v1452_v21  ;;  %v1483_v1 = vmul.f32 %v1403_v38, %v2610_v32  ;;  %v1379_v23 = vld [vmem:[%s3149_s8 + $0x158] sm:$0xff]  ;;  %v1374_v20 = vld [vmem:[%s3149_s8 + $0x130] sm:$0xff]  ;;  %v1388_v32 = vld [vmem:[%s3149_s8 + $0x1a0] sm:$0xff] }
 0x444   :  { %v1459_v47 = vmul.f32 %v1379_v23, %v2526_v12  ;;  %v1364_v12 = vld [vmem:[%s3149_s8 + $0xe0] sm:$0xff]  ;;  %v3158_v29 = vld [vmem:[#allocation17_spill] sm:$0xff]  ;;  %v1415_v23 = vld [vmem:[%s3149_s8 + $0x278] sm:$0xff] }
 0x445   :  { %1502 = vmatpush.msra.mxu0 %v1461_v19  ;;  %1525 = vmatpush.msra.mxu1 %v1447_v26  ;;  %v1267_v21 = vpop.f32.mrf.mxu2  ;;  %v1426_v19 = vmul.f32 %v1346_v57, %v2460_v45  ;;  %v1413_v45 = vld [vmem:[%s3149_s8 + $0x268] sm:$0xff] }
 0x446   :  { %v2642_v16 = vpop.f32.mrf.mxu3  ;;  %v1494_v26 = vmul.f32 %v1414_v44, %v1267_v21  ;;  %v1468_v21 = vmul.f32 %v1388_v32, %v2544_v5  ;;  %v1373_v5 = vld [vmem:[%s3149_s8 + $0x128] sm:$0xff] }
 0x447   :  { %1503 = vmatpush.msra.mxu0 %v1456_v28  ;;  %1526 = vmatpush.msra.mxu1 %v1442_v34  ;;  %v1399_v34 = vld [vmem:[%s3149_s8 + $0x1f8] sm:$0xff]  ;;  %v1453_v53 = vmul.f32 %v1373_v5, %v2520_v10  ;;  %v1358_v10 = vld [vmem:[%s3149_s8 + $0xb0] sm:$0xff] }
 0x448   :  { %v1395_v5 = vld [vmem:[%s3149_s8 + $0x1d8] sm:$0xff] }
 0x449   :  { %1504 = vmatpush.msra.mxu0 %v1451_v25  ;;  %1527 = vmatpush.msra.mxu1 %v1437_v27  ;;  %v1202_v28 = vpop.f32.mrf.mxu1  ;;  %v1479_v27 = vmul.f32 %v1399_v34, %v2557_v30  ;;  %v1384_v30 = vld [vmem:[%s3149_s8 + $0x180] sm:$0xff]  ;;  %v1438_v34 = vmul.f32 %v1358_v10, %v2488_v56 }
 0x44a   :  { %v1493_v25 = vmul.f32 %v1413_v45, %v1202_v28 }
 0x44b   :  { %1505 = vmatpush.msra.mxu0 %v1446_v31  ;;  %1528 = vmatpush.msra.mxu1 %v1432_v35  ;;  %v1488_v35 = vmul.f32 %v1408_v41, %v1199_v42  ;;  %v1398_v31 = vld [vmem:[%s3149_s8 + $0x1f0] sm:$0xff]  ;;  %v1393_v42 = vld [vmem:[%s3149_s8 + $0x1c8] sm:$0xff] }
 0x44c   :  { %v1473_v60 = vmul.f32 %v1393_v42, %v2550_v9  ;;  %v1378_v9 = vld [vmem:[%s3149_s8 + $0x150] sm:$0xff]  ;;  %v1675_v42 = vld [vmem:[%s3151_s10 + $0x278] sm:$0xff] }
 0x44d   :  { %1506 = vmatpush.msra.mxu0 %v1441_v24  ;;  %1529 = vmatpush.msra.mxu1 %v1427_v13  ;;  %v1464_v13 = vmul.f32 %v1384_v30, %v2534_v17  ;;  %v1478_v24 = vmul.f32 %v1398_v31, %v2573_v37  ;;  %v1369_v37 = vld [vmem:[%s3149_s8 + $0x108] sm:$0xff]  ;;  %v1383_v17 = vld [vmem:[%s3149_s8 + $0x178] sm:$0xff] }
 0x44e   :  { %v2676_v2 = vpop.f32.mrf.mxu3  ;;  %v1449_v44 = vmul.f32 %v1369_v37, %v2504_v0  ;;  %v1463_v57 = vmul.f32 %v1383_v17, %v2538_v61  ;;  %v1354_v0 = vld [vmem:[%s3149_s8 + $0x90] sm:$0xff]  ;;  %v1368_v61 = vld [vmem:[%s3149_s8 + $0x100] sm:$0xff]  ;;  %1760 = vmatpush.msra.mxu3 %v1675_v42  ;;  %v1657_v37 = vld [vmem:[%s3151_s10 + $0x1e8] sm:$0xff] }
 0x44f   :  { %1507 = vmatpush.msra.mxu0 %v1436_v22  ;;  %1530 = vmatpush.msra.mxu1 %v1422_v8  ;;  %v1454_v22 = vmul.f32 %v1374_v20, %v2516_v6  ;;  %v1359_v6 = vld [vmem:[%s3149_s8 + $0xb8] sm:$0xff]  ;;  %v1448_v63 = vmul.f32 %v1368_v61, %v2512_v4  ;;  %v1353_v4 = vld [vmem:[%s3149_s8 + $0x88] sm:$0xff]  ;;  %v1350_v42 = vld [vmem:[%s3149_s8 + $0x70] sm:$0xff] }
 0x450   :  { %v1439_v40 = vmul.f32 %v1359_v6, %v2482_v54  ;;  %v1344_v54 = vld [vmem:[%s3149_s8 + $0x40] sm:$0xff]  ;;  %v1433_v28 = vmul.f32 %v1353_v4, %v2476_v52  ;;  %v1405_v20 = vld [vmem:[%s3149_s8 + $0x228] sm:$0xff]  ;;  %v1610_v6 = vld [vmem:[%s3151_s10 + $0x70] sm:$0xff] }
 0x451   :  { %1508 = vmatpush.msra.mxu0 %v1431_v18  ;;  %1531 = vmatpush.msra.mxu1 %v1417_v3  ;;  %v1444_v3 = vmul.f32 %v1364_v12, %v2494_v59  ;;  %v1458_v18 = vmul.f32 %v1378_v9, %v2530_v14  ;;  %v1349_v59 = vld [vmem:[%s3149_s8 + $0x68] sm:$0xff]  ;;  %v1363_v14 = vld [vmem:[%s3149_s8 + $0xd8] sm:$0xff]  ;;  %v1656_v12 = vld [vmem:[%s3151_s10 + $0x1e0] sm:$0xff] }
 0x452   :  { %v1429_v36 = vmul.f32 %v1349_v59, %v2462_v46  ;;  %v1348_v46 = vld [vmem:[%s3149_s8 + $0x60] sm:$0xff]  ;;  %v1609_v61 = vld [vmem:[%s3151_s10 + $0x68] sm:$0xff] }
 0x453   :  { %1556 = vmatpush.msrb.mxu1 %v1494_v26  ;;  %1509 = vmatpush.msra.mxu0 %v1426_v19  ;;  %v1434_v19 = vmul.f32 %v1354_v0, %v2472_v50  ;;  %v1339_v50 = vld [vmem:[%s3149_s8 + $0x18] sm:$0xff]  ;;  %v3159_v52 = vld [vmem:[#allocation16_spill] sm:$0xff] }
 0x454   :  { %v1671_v0 = vld [vmem:[%s3151_s10 + $0x258] sm:$0xff]  ;;  %v1652_v4 = vld [vmem:[%s3151_s10 + $0x1c0] sm:$0xff] }
 0x455   :  { %1557 = vmatpush.msrb.mxu1 %v1489_v49  ;;  %1510 = vmatpush.msra.mxu0 %v1421_v15  ;;  %v1443_v49 = vmul.f32 %v1363_v14, %v2500_v62  ;;  %v1424_v15 = vmul.f32 %v1344_v54, %v2454_v43  ;;  %v1419_v62 = vmul.f32 %v1339_v50, %v2444_v39  ;;  %v1343_v43 = vld [vmem:[%s3149_s8 + $0x38] sm:$0xff]  ;;  %v1670_v14 = vld [vmem:[%s3151_s10 + $0x250] sm:$0xff]  ;;  %v1653_v54 = vld [vmem:[%s3151_s10 + $0x1c8] sm:$0xff] }
 0x456   :  { %v2709_v55 = vpop.f32.mrf.mxu3  ;;  %v1423_v39 = vmul.f32 %v1343_v43, %v3158_v29  ;;  %v1380_v50 = vld [vmem:[%s3149_s8 + $0x160] sm:$0xff]  ;;  %v1650_v29 = vld [vmem:[%s3151_s10 + $0x1b0] sm:$0xff] }
 0x457   :  { %1558 = vmatpush.msrb.mxu1 %v1484_v58  ;;  %1511 = vmatpush.msra.mxu0 %v1416_v11  ;;  %v3157_v58 = vld [vmem:[#allocation18_spill] sm:$0xff] }
 0x458   :  { %v1428_v56 = vmul.f32 %v1348_v46, %v3157_v58  ;;  %v1338_v11 = vld [vmem:[%s3149_s8 + $0x10] sm:$0xff]  ;;  %v1668_v46 = vld [vmem:[%s3151_s10 + $0x240] sm:$0xff]  ;;  %v1605_v58 = vld [vmem:[%s3151_s10 + $0x48] sm:$0xff] }
 0x459   :  { %1536 = vmatpush.msrb.mxu0 %v1493_v25  ;;  %1559 = vmatpush.msrb.mxu1 %v1479_v27  ;;  %v1418_v41 = vmul.f32 %v1338_v11, %v3159_v52  ;;  %v1370_v11 = vld [vmem:[%s3149_s8 + $0x110] sm:$0xff]  ;;  %v1604_v52 = vld [vmem:[%s3151_s10 + $0x40] sm:$0xff] }
 0x45b   :  { %1537 = vmatpush.msrb.mxu0 %v1488_v35  ;;  %1560 = vmatpush.msrb.mxu1 %v1474_v7  ;;  %v2827_v7 = vld [vmem:[%s3150_s9] sm:$0x3] }
 0x45c   :  { %1532 = vmatmul.f32.vlgmr.msra.gmra.mxu1 %v2827_v7  ;;  %1512 = vmatmul.f32.vlgmr.msra.gmra.mxu0 %v2827_v7 }
 0x45d   :  { %1538 = vmatpush.msrb.mxu0 %v1483_v1  ;;  %1561 = vmatpush.msrb.mxu1 %v1469_v51  ;;  %v1659_v1 = vld [vmem:[%s3151_s10 + $0x1f8] sm:$0xff] }
 0x45e   :  { %v2742_v8 = vpop.f32.mrf.mxu3  ;;  %1740 = vmatpush.msra.mxu2 %v1659_v1  ;;  %v1355_v1 = vld [vmem:[%s3149_s8 + $0x98] sm:$0xff] }
 0x45f   :  { %1539 = vmatpush.msrb.mxu0 %v1478_v24  ;;  %1562 = vmatpush.msrb.mxu1 %v1464_v13  ;;  %v1410_v13 = vld [vmem:[%s3149_s8 + $0x250] sm:$0xff] }
 0x461   :  { %1540 = vmatpush.msrb.mxu0 %v1473_v60  ;;  %1563 = vmatpush.msrb.mxu1 %v1459_v47  ;;  %v1658_v47 = vld [vmem:[%s3151_s10 + $0x1f0] sm:$0xff] }
 0x462   :  { %v1674_v60 = vld [vmem:[%s3151_s10 + $0x270] sm:$0xff]  ;;  %1741 = vmatpush.msra.mxu2 %v1658_v47 }
 0x463   :  { %1541 = vmatpush.msrb.mxu0 %v1468_v21  ;;  %1564 = vmatpush.msrb.mxu1 %v1454_v22  ;;  %v1673_v22 = vld [vmem:[%s3151_s10 + $0x268] sm:$0xff]  ;;  %v1400_v21 = vld [vmem:[%s3149_s8 + $0x200] sm:$0xff] }
 0x464   :  { %1761 = vmatpush.msra.mxu3 %v1674_v60  ;;  %1742 = vmatpush.msra.mxu2 %v1657_v37  ;;  %v1598_v60 = vld [vmem:[%s3151_s10 + $0x10] sm:$0xff]  ;;  %v1597_v37 = vld [vmem:[%s3151_s10 + $0x8] sm:$0xff] }
 0x465   :  { %1542 = vmatpush.msrb.mxu0 %v1463_v57  ;;  %1565 = vmatpush.msrb.mxu1 %v1449_v44  ;;  %v1672_v44 = vld [vmem:[%s3151_s10 + $0x260] sm:$0xff]  ;;  %v1611_v57 = vld [vmem:[%s3151_s10 + $0x78] sm:$0xff] }
 0x466   :  { %v2776_v26 = vpop.f32.mrf.mxu3  ;;  %1762 = vmatpush.msra.mxu3 %v1673_v22  ;;  %1743 = vmatpush.msra.mxu2 %v1656_v12  ;;  %v1643_v22 = vld [vmem:[%s3151_s10 + $0x178] sm:$0xff]  ;;  %v1642_v12 = vld [vmem:[%s3151_s10 + $0x170] sm:$0xff] }
 0x467   :  { %1543 = vmatpush.msrb.mxu0 %v1458_v18  ;;  %1566 = vmatpush.msrb.mxu1 %v1444_v3  ;;  %v1655_v3 = vld [vmem:[%s3151_s10 + $0x1d8] sm:$0xff] }
 0x468   :  { %1763 = vmatpush.msra.mxu3 %v1672_v44  ;;  %1744 = vmatpush.msra.mxu2 %v1655_v3  ;;  %v1623_v44 = vld [vmem:[%s3151_s10 + $0xd8] sm:$0xff]  ;;  %v1621_v3 = vld [vmem:[%s3151_s10 + $0xc8] sm:$0xff] }
 0x469   :  { %1544 = vmatpush.msrb.mxu0 %v1453_v53  ;;  %1567 = vmatpush.msrb.mxu1 %v1439_v40  ;;  %v1390_v40 = vld [vmem:[%s3149_s8 + $0x1b0] sm:$0xff] }
 0x46a   :  { %v1654_v53 = vld [vmem:[%s3151_s10 + $0x1d0] sm:$0xff]  ;;  %1764 = vmatpush.msra.mxu3 %v1671_v0  ;;  %v1620_v0 = vld [vmem:[%s3151_s10 + $0xc0] sm:$0xff] }
 0x46b   :  { %1545 = vmatpush.msrb.mxu0 %v1448_v63  ;;  %1568 = vmatpush.msrb.mxu1 %v1434_v19  ;;  %v1608_v19 = vld [vmem:[%s3151_s10 + $0x60] sm:$0xff]  ;;  %v1385_v63 = vld [vmem:[%s3149_s8 + $0x188] sm:$0xff] }
 0x46c   :  { %1745 = vmatpush.msra.mxu2 %v1654_v53  ;;  %1765 = vmatpush.msra.mxu3 %v1670_v14  ;;  %v1636_v53 = vld [vmem:[%s3151_s10 + $0x140] sm:$0xff]  ;;  %v1635_v14 = vld [vmem:[%s3151_s10 + $0x138] sm:$0xff] }
 0x46d   :  { %1546 = vmatpush.msrb.mxu0 %v1443_v49  ;;  %1569 = vmatpush.msrb.mxu1 %v1429_v36  ;;  %v1607_v36 = vld [vmem:[%s3151_s10 + $0x58] sm:$0xff]  ;;  %v1669_v49 = vld [vmem:[%s3151_s10 + $0x248] sm:$0xff] }
 0x46e   :  { %v2807_v45 = vpop.f32.mrf.mxu3  ;;  %1746 = vmatpush.msra.mxu2 %v1653_v54  ;;  %1766 = vmatpush.msra.mxu3 %v1669_v49  ;;  %v1664_v54 = vld [vmem:[%s3151_s10 + $0x220] sm:$0xff]  ;;  %v1647_v49 = vld [vmem:[%s3151_s10 + $0x198] sm:$0xff] }
 0x46f   :  { %1547 = vmatpush.msrb.mxu0 %v1438_v34  ;;  %1570 = vmatpush.msrb.mxu1 %v1424_v15  ;;  %v1606_v34 = vld [vmem:[%s3151_s10 + $0x50] sm:$0xff] }
 0x470   :  { %1747 = vmatpush.msra.mxu2 %v1652_v4  ;;  %1767 = vmatpush.msra.mxu3 %v1668_v46  ;;  %v1632_v4 = vld [vmem:[%s3151_s10 + $0x120] sm:$0xff]  ;;  %v1614_v46 = vld [vmem:[%s3151_s10 + $0x90] sm:$0xff] }
 0x471   :  { %1548 = vmatpush.msrb.mxu0 %v1433_v28  ;;  %1571 = vmatpush.msrb.mxu1 %v1419_v62  ;;  %v1375_v62 = vld [vmem:[%s3149_s8 + $0x138] sm:$0xff] }
 0x472   :  { %1572 = vmatmul.f32.vlgmr.msrb.gmra.mxu1 %v2827_v7  ;;  %v1651_v28 = vld [vmem:[%s3151_s10 + $0x1b8] sm:$0xff] }
 0x473   :  { %1549 = vmatpush.msrb.mxu0 %v1428_v56  ;;  %1680 = vmatpush.msra.mxu1 %v1611_v57  ;;  %v1667_v56 = vld [vmem:[%s3151_s10 + $0x238] sm:$0xff]  ;;  %v1640_v57 = vld [vmem:[%s3151_s10 + $0x160] sm:$0xff] }
 0x474   :  { %1748 = vmatpush.msra.mxu2 %v1651_v28  ;;  %1768 = vmatpush.msra.mxu3 %v1667_v56  ;;  %v1613_v28 = vld [vmem:[%s3151_s10 + $0x88] sm:$0xff]  ;;  %v1663_v56 = vld [vmem:[%s3151_s10 + $0x218] sm:$0xff] }
 0x475   :  { %1550 = vmatpush.msrb.mxu0 %v1423_v39  ;;  %1681 = vmatpush.msra.mxu1 %v1610_v6  ;;  %v1622_v6 = vld [vmem:[%s3151_s10 + $0xd0] sm:$0xff] }
 0x476   :  { %v2818_v27 = vpop.f32.mrf.mxu3  ;;  %1749 = vmatpush.msra.mxu2 %v1650_v29  ;;  %v1629_v29 = vld [vmem:[%s3151_s10 + $0x108] sm:$0xff] }
 0x477   :  { %1551 = vmatpush.msrb.mxu0 %v1418_v41  ;;  %1682 = vmatpush.msra.mxu1 %v1609_v61  ;;  %v1455_v39 = vmul.f32 %v1375_v62, %v2818_v27  ;;  %v1666_v41 = vld [vmem:[%s3151_s10 + $0x230] sm:$0xff]  ;;  %v1649_v27 = vld [vmem:[%s3151_s10 + $0x1a8] sm:$0xff]  ;;  %v1631_v62 = vld [vmem:[%s3151_s10 + $0x118] sm:$0xff] }
 0x478   :  { %1552 = vmatmul.f32.vlgmr.msrb.gmra.mxu0 %v2827_v7  ;;  %1769 = vmatpush.msra.mxu3 %v1666_v41  ;;  %v1637_v61 = vld [vmem:[%s3151_s10 + $0x148] sm:$0xff] }
 0x479   :  { %1683 = vmatpush.msra.mxu1 %v1608_v19  ;;  %1750 = vmatpush.msra.mxu2 %v1649_v27  ;;  %v1617_v19 = vld [vmem:[%s3151_s10 + $0xa8] sm:$0xff] }
 0x47a   :  { %v1661_v41 = vld [vmem:[%s3151_s10 + $0x208] sm:$0xff] }
 0x47b   :  { %1684 = vmatpush.msra.mxu1 %v1607_v36  ;;  %v1633_v36 = vld [vmem:[%s3151_s10 + $0x128] sm:$0xff] }
 0x47d   :  { %1685 = vmatpush.msra.mxu1 %v1606_v34  ;;  %v1645_v34 = vld [vmem:[%s3151_s10 + $0x188] sm:$0xff] }
 0x47e   :  { %v2820_v25 = vpop.f32.mrf.mxu3 }
 0x47f   :  { %v1460_v43 = vmul.f32 %v1380_v50, %v2820_v25  ;;  %v1365_v25 = vld [vmem:[%s3149_s8 + $0xe8] sm:$0xff]  ;;  %1686 = vmatpush.msra.mxu1 %v1605_v58  ;;  %v1615_v50 = vld [vmem:[%s3151_s10 + $0x98] sm:$0xff]  ;;  %v1644_v58 = vld [vmem:[%s3151_s10 + $0x180] sm:$0xff] }
 0x481   :  { %1687 = vmatpush.msra.mxu1 %v1604_v52  ;;  %v1662_v52 = vld [vmem:[%s3151_s10 + $0x210] sm:$0xff] }
 0x486   :  { %v2822_v33 = vpop.f32.mrf.mxu3 }
 0x487   :  { %v1465_v15 = vmul.f32 %v1385_v63, %v2822_v33  ;;  %v1450_v33 = vmul.f32 %v1370_v11, %v2807_v45  ;;  %v1602_v45 = vld [vmem:[%s3151_s10 + $0x30] sm:$0xff]  ;;  %v1612_v11 = vld [vmem:[%s3151_s10 + $0x80] sm:$0xff] }
 0x488   :  { %v1634_v63 = vld [vmem:[%s3151_s10 + $0x130] sm:$0xff] }
 0x48e   :  { %v1317_v38 = vpop.f32.mrf.mxu3 }
 0x48f   :  { %v1470_v10 = vmul.f32 %v1390_v40, %v1317_v38  ;;  %v1603_v38 = vld [vmem:[%s3151_s10 + $0x38] sm:$0xff] }
 0x490   :  { %1688 = vmatpush.msra.mxu1 %v1603_v38  ;;  %v1619_v40 = vld [vmem:[%s3151_s10 + $0xb8] sm:$0xff] }
 0x492   :  { %1689 = vmatpush.msra.mxu1 %v1602_v45  ;;  %v1923_v45 = vld [vmem:[%s3152_s11] ss:$0 sm:$0xff] }
 0x496   :  { %v1320_v35 = vpop.f32.mrf.mxu3 }
 0x497   :  { %v1475_v59 = vmul.f32 %v1395_v5, %v1320_v35  ;;  %v1665_v35 = vld [vmem:[%s3151_s10 + $0x228] sm:$0xff]  ;;  %v1639_v5 = vld [vmem:[%s3151_s10 + $0x158] sm:$0xff] }
 0x498   :  { %1770 = vmatpush.msra.mxu3 %v1665_v35 }
 0x49a   :  { %1771 = vmatpush.msra.mxu3 %v1664_v54 }
 0x49c   :  { %1772 = vmatpush.msra.mxu3 %v1663_v56 }
 0x49e   :  { %v1323_v30 = vpop.f32.mrf.mxu3  ;;  %1773 = vmatpush.msra.mxu3 %v1662_v52 }
 0x49f   :  { %v1480_v18 = vmul.f32 %v1400_v21, %v1323_v30  ;;  %v1360_v30 = vld [vmem:[%s3149_s8 + $0xc0] sm:$0xff]  ;;  %v1625_v21 = vld [vmem:[%s3151_s10 + $0xe8] sm:$0xff] }
 0x4a0   :  { %1774 = vmatpush.msra.mxu3 %v1661_v41 }
 0x4a6   :  { %v1326_v31 = vpop.f32.mrf.mxu3 }
 0x4a7   :  { %v1485_v9 = vmul.f32 %v1405_v20, %v1326_v31  ;;  %v1445_v31 = vmul.f32 %v1365_v25, %v2776_v26  ;;  %v1601_v26 = vld [vmem:[%s3151_s10 + $0x28] sm:$0xff]  ;;  %v1430_v20 = vmul.f32 %v1350_v42, %v2676_v2  ;;  %v1660_v25 = vld [vmem:[%s3151_s10 + $0x200] sm:$0xff] }
 0x4a8   :  { %1690 = vmatpush.msra.mxu1 %v1601_v26  ;;  %1775 = vmatpush.msra.mxu3 %v1660_v25 }
 0x4ae   :  { %v1329_v51 = vpop.f32.mrf.mxu3 }
 0x4af   :  { %v1490_v17 = vmul.f32 %v1410_v13, %v1329_v51  ;;  %v1648_v51 = vld [vmem:[%s3151_s10 + $0x1a0] sm:$0xff]  ;;  %v1435_v13 = vmul.f32 %v1355_v1, %v2709_v55 }
 0x4b0   :  { %1751 = vmatpush.msra.mxu2 %v1648_v51  ;;  %v1340_v55 = vld [vmem:[%s3149_s8 + $0x20] sm:$0xff] }
 0x4b1   :  { %v1420_v2 = vmul.f32 %v1340_v55, %v2607_v48  ;;  %v1626_v48 = vld [vmem:[%s3151_s10 + $0xf0] sm:$0xff] }
 0x4b2   :  { %1752 = vmatpush.msra.mxu2 %v1647_v49 }
 0x4b6   :  { %v1332_v24 = vpop.f32.mrf.mxu3 }
 0x4b7   :  { %v1495_v32 = vmul.f32 %v1415_v23, %v1332_v24  ;;  %v1440_v23 = vmul.f32 %v1360_v30, %v2742_v8  ;;  %v1600_v24 = vld [vmem:[%s3151_s10 + $0x20] sm:$0xff]  ;;  %v1345_v8 = vld [vmem:[%s3149_s8 + $0x48] sm:$0xff] }
 0x4b8   :  { %1691 = vmatpush.msra.mxu1 %v1600_v24  ;;  %v1425_v47 = vmul.f32 %v1345_v8, %v2642_v16  ;;  %v1596_v16 = vld [vmem:[%s3151_s10] sm:$0xff] }
 0x4b9   :  { %1576 = vmatpush.msra.mxu0 %v1495_v32  ;;  %v1599_v32 = vld [vmem:[%s3151_s10 + $0x18] sm:$0xff] }
 0x4ba   :  { %1692 = vmatpush.msra.mxu1 %v1599_v32 }
 0x4bb   :  { %1577 = vmatpush.msra.mxu0 %v1490_v17  ;;  %v1627_v17 = vld [vmem:[%s3151_s10 + $0xf8] sm:$0xff] }
 0x4bc   :  { %1693 = vmatpush.msra.mxu1 %v1598_v60 }
 0x4bd   :  { %1578 = vmatpush.msra.mxu0 %v1485_v9  ;;  %v1641_v9 = vld [vmem:[%s3151_s10 + $0x168] sm:$0xff] }
 0x4be   :  { %1694 = vmatpush.msra.mxu1 %v1597_v37 }
 0x4bf   :  { %1579 = vmatpush.msra.mxu0 %v1480_v18  ;;  %v1638_v18 = vld [vmem:[%s3151_s10 + $0x150] sm:$0xff] }
 0x4c0   :  { %1695 = vmatpush.msra.mxu1 %v1596_v16 }
 0x4c1   :  { %1580 = vmatpush.msra.mxu0 %v1475_v59  ;;  %v1618_v59 = vld [vmem:[%s3151_s10 + $0xb0] sm:$0xff] }
 0x4c2   :  { %1720 = vmatpush.msrb.mxu1 %v1643_v22 }
 0x4c3   :  { %1581 = vmatpush.msra.mxu0 %v1470_v10  ;;  %v1616_v10 = vld [vmem:[%s3151_s10 + $0xa0] sm:$0xff] }
 0x4c4   :  { %1721 = vmatpush.msrb.mxu1 %v1642_v12 }
 0x4c5   :  { %1582 = vmatpush.msra.mxu0 %v1465_v15  ;;  %v1646_v15 = vld [vmem:[%s3151_s10 + $0x190] sm:$0xff] }
 0x4c6   :  { %1722 = vmatpush.msrb.mxu1 %v1641_v9  ;;  %1753 = vmatpush.msra.mxu2 %v1646_v15 }
 0x4c7   :  { %1583 = vmatpush.msra.mxu0 %v1460_v43  ;;  %v1630_v43 = vld [vmem:[%s3151_s10 + $0x110] sm:$0xff] }
 0x4c8   :  { %1723 = vmatpush.msrb.mxu1 %v1640_v57  ;;  %1754 = vmatpush.msra.mxu2 %v1645_v34 }
 0x4c9   :  { %1584 = vmatpush.msra.mxu0 %v1455_v39  ;;  %v1628_v39 = vld [vmem:[%s3151_s10 + $0x100] sm:$0xff] }
 0x4ca   :  { %1724 = vmatpush.msrb.mxu1 %v1639_v5  ;;  %1755 = vmatpush.msra.mxu2 %v1644_v58 }
 0x4cb   :  { %1585 = vmatpush.msra.mxu0 %v1450_v33 }
 0x4cc   :  { %1725 = vmatpush.msrb.mxu1 %v1638_v18 }
 0x4cd   :  { %1586 = vmatpush.msra.mxu0 %v1445_v31 }
 0x4ce   :  { %1726 = vmatpush.msrb.mxu1 %v1637_v61 }
 0x4cf   :  { %1587 = vmatpush.msra.mxu0 %v1440_v23 }
 0x4d0   :  { %1727 = vmatpush.msrb.mxu1 %v1636_v53 }
 0x4d1   :  { %1588 = vmatpush.msra.mxu0 %v1435_v13 }
 0x4d2   :  { %1728 = vmatpush.msrb.mxu1 %v1635_v14 }
 0x4d3   :  { %1589 = vmatpush.msra.mxu0 %v1430_v20 }
 0x4d4   :  { %1729 = vmatpush.msrb.mxu1 %v1634_v63 }
 0x4d5   :  { %1590 = vmatpush.msra.mxu0 %v1425_v47 }
 0x4d6   :  { %1730 = vmatpush.msrb.mxu1 %v1633_v36 }
 0x4d7   :  { %1591 = vmatpush.msra.mxu0 %v1420_v2 }
 0x4d8   :  { %1592 = vmatmul.f32.vlgmr.msra.gmra.mxu0 %v2827_v7  ;;  %v1624_v7 = vld [vmem:[%s3151_s10 + $0xe0] sm:$0xff]  ;;  %1731 = vmatpush.msrb.mxu1 %v1632_v4  ;;  %s2089_s10 = smov [#allocation11]  }
 0x4d9   :  { %1700 = vmatpush.msrb.mxu0 %v1627_v17  ;;  %v1533_v27 = vpop.f32.mrf.mxu1  ;;  %v1513_v33 = vpop.f32.mrf.mxu0  ;;  %s1800_s11 = sshll.u32 %s2089_s10, 4  ;;  %s1801_s11 = int_to_ptr.vmem [resolvable:$true] %s1800_s11 }
 0x4da   :  { %1732 = vmatpush.msrb.mxu1 %v1631_v62 }
 0x4db   :  { %1701 = vmatpush.msrb.mxu0 %v1626_v48  ;;  %1696 = vmatmul.f32.vlgmr.msra.gmra.mxu1 %v1513_v33 }
 0x4dc   :  { %1733 = vmatpush.msrb.mxu1 %v1630_v43 }
 0x4dd   :  { %1702 = vmatpush.msrb.mxu0 %v1625_v21 }
 0x4de   :  { %1734 = vmatpush.msrb.mxu1 %v1629_v29 }
 0x4df   :  { %1703 = vmatpush.msrb.mxu0 %v1624_v7 }
 0x4e0   :  { %1735 = vmatpush.msrb.mxu1 %v1628_v39 }
 0x4e1   :  { %1704 = vmatpush.msrb.mxu0 %v1623_v44 }
 0x4e3   :  { %1705 = vmatpush.msrb.mxu0 %v1622_v6 }
 0x4e5   :  { %1706 = vmatpush.msrb.mxu0 %v1621_v3 }
 0x4e7   :  { %1707 = vmatpush.msrb.mxu0 %v1620_v0 }
 0x4e9   :  { %1708 = vmatpush.msrb.mxu0 %v1619_v40 }
 0x4eb   :  { %1709 = vmatpush.msrb.mxu0 %v1618_v59 }
 0x4ed   :  { %1710 = vmatpush.msrb.mxu0 %v1617_v19 }
 0x4ef   :  { %1711 = vmatpush.msrb.mxu0 %v1616_v10  ;;  %v1573_v38 = vpop.f32.mrf.mxu1 }
 0x4f0   :  { %1756 = vmatmul.f32.vlgmr.msra.gmra.mxu2 %v1573_v38 }
 0x4f1   :  { %1712 = vmatpush.msrb.mxu0 %v1615_v50 }
 0x4f3   :  { %1713 = vmatpush.msrb.mxu0 %v1614_v46 }
 0x4f5   :  { %1714 = vmatpush.msrb.mxu0 %v1613_v28  ;;  %v1553_v35 = vpop.f32.mrf.mxu0 }
 0x4f6   :  { %1736 = vmatmul.f32.vlgmr.msrb.gmra.mxu1 %v1553_v35 }
 0x4f7   :  { %1715 = vmatpush.msrb.mxu0 %v1612_v11 }
 0x4f8   :  { %1716 = vmatmul.f32.vlgmr.msrb.gmra.mxu0 %v1533_v27 }
 0x555   :  { %v1593_v30 = vpop.f32.mrf.mxu0 }
 0x556   :  { %1776 = vmatmul.f32.vlgmr.msra.gmra.mxu3 %v1593_v30 }
 0x558   :  { %v1697_v31 = vpop.f32.mrf.mxu1 }
 0x559   :  { %v1698_v51 = vadd.f32 %v1923_v45, %v1697_v31 }
 0x573   :  { %v1737_v26 = vpop.f32.mrf.mxu1  ;;  %v1757_v13 = vpop.f32.mrf.mxu2 }
 0x575   :  { %v1717_v1 = vpop.f32.mrf.mxu0 }
 0x576   :  { %v1718_v23 = vadd.f32 %v1717_v1, %v1698_v51 }
 0x578   :  { %v1738_v42 = vadd.f32 %v1737_v26, %v1718_v23 }
 0x57a   :  { %v1758_v24 = vadd.f32 %v1757_v13, %v1738_v42 }
 0x5d9   :  { %v1777_v8 = vpop.f32.mrf.mxu3 }
 0x5da   :  { %v1778_v20 = vadd.f32 %v1777_v8, %v1758_v24 }
 0x5dc   :  { %v1781_v32 = vsel %vm1780_vm1, %v1778_v20, -inf }
 0x5dd   :  { %1782 = vmax.xlane.f32.xlu1 %v1781_v32 }
 0x650   :  { %v1783_v55 = vpop.xlane.xlu1 %1782 }
 0x651   :  { %v1784_v47 = vsub.f32 %v1778_v20, %v1783_v55 }
 0x653   :  { %v1785_v60 = vmul.f32 1.442695, %v1784_v47 }
 0x655   :  { %1924 = vpow2.f32 %v1785_v60 }
 0x65b   :  { %v1925_v2 = vpop.eup %1924 }
 0x65c   :  { %v1787_v37 = vsel %vm1780_vm1, %v1925_v2, 0.0 }
 0x65d   :  { %1788 = vadd.xlane.f32.xlu1 %v1787_v37 }
 0x6d0   :  { %v1789_v17 = vpop.xlane.xlu1 %1788 }
 0x6d1   :  { %1926 = vlog2.f32 %v1789_v17 }
 0x6d7   :  { %v1927_v16 = vpop.eup %1926 }
 0x6d8   :  { %v1791_v48 = vmul.f32 0.6931472, %v1927_v16 }
 0x6da   :  { %v1792_v22 = vadd.f32 %v1791_v48, %v1783_v55 }
 0x6dc   :  { %v1793_v21 = vsub.f32 %v1778_v20, %v1792_v22 }
 0x6de   :  { %1794 = vst.msk [vmem:[#allocation11] sm:$0x3] %vm1780_vm1, %v1793_v21 }
 0x6df   :  { %1805 = dma.vmem_to_hbm [thread:$0]  %s1801_s11, 32, %s1803_s26, [#allocation4]  }
 0x6e0   :  { %2078 = dma.done.wait [#allocation4], 32  }
 0x6e1   :  { %2079 = vsyncadd [#allocation4], 4294967264 }
 0x6e2   :  { %1810 = vsyncpa [#allocation3], 1 }
 0x6e3   :  { %1811 = vsyncpa [#allocation6], 1 }
 0x6e4   :  { %1812 = vsyncpa [#allocation9], 1 }
 0x6e5   :  { %1813 = vsyncpa [#allocation4], 1 }

</bundles_post_ra>
